<compile_context>
chip_gen: v7x
topology: tpu7x:2x2x1
jax: 0.10.0
libtpu: 0.0.40
codegen_flags: <defaults>
</compile_context>

<pallas_src>
import math
from functools import partial

import jax
import jax.numpy as jnp
from jax.experimental import pallas as pl
from jax.experimental.pallas import tpu as pltpu


# ------------------------------ helpers -------------------------------------

def _row_tile(n, max_tile=256):
    """Largest row tile that is a multiple of 8, divides n and is <= max_tile."""
    for t in (max_tile, 128, 64, 32, 16, 8):
        if t <= n and n % t == 0:
            return t
    return n  # fall back to the full dimension (always legal)


def _ln(x, g, b, eps=1e-5):
    mu = jnp.mean(x, axis=-1, keepdims=True)
    var = jnp.mean((x - mu) ** 2, axis=-1, keepdims=True)
    return (x - mu) * jax.lax.rsqrt(var + eps) * g + b


# ----------------------- fused QKV + sigma projection -----------------------

def _fused_proj_kernel(x_ref, w_ref, b_ref, o_ref):
    # x: (T, D) f32, w: (D, P) bf16, b: (1, P) f32 ; P = 3*H*E + H
    x = x_ref[...].astype(jnp.bfloat16)
    o_ref[...] = jnp.dot(x, w_ref[...], preferred_element_type=jnp.float32) + b_ref[...]


def fused_projection(x, w_bf16, b):
    """y = x @ w + b on row-flattened activations.  x: (N, D) -> (N, P)."""
    N, D = x.shape
    P = w_bf16.shape[1]
    T = _row_tile(N)
    return pl.pallas_call(
        _fused_proj_kernel,
        out_shape=jax.ShapeDtypeStruct((N, P), jnp.float32),
        grid=(N // T,),
        in_specs=[
            pl.BlockSpec((T, D), lambda i: (i, 0)),
            pl.BlockSpec((D, P), lambda i: (0, 0)),
            pl.BlockSpec((1, P), lambda i: (0, 0)),
        ],
        out_specs=pl.BlockSpec((T, P), lambda i: (i, 0)),
        compiler_params=pltpu.CompilerParams(dimension_semantics=("parallel",)),
    )(x, w_bf16, b.reshape(1, P))


# ----------------------------- anomaly attention ----------------------------

def _anomaly_attn_kernel(fused_ref, ndist_ref, o_ref, series_ref, prior_ref,
                         sigma_ref, *, scale, n_heads, d_head):
    # fused_ref : (L, 3*H*E + H)  -> columns [q | k | v | sigma]
    # ndist_ref : (L, L)  precomputed -|i-j|^2 / 2
    # o_ref     : (L, H*E) ; series/prior : (H, L, L) ; sigma : (H, L, 1)
    HE = n_heads * d_head
    ndist = ndist_ref[...]
    inv_sqrt_2pi = 1.0 / math.sqrt(2.0 * math.pi)
    ln3 = math.log(3.0)

    for h in range(n_heads):                                   # static unroll
        qh = fused_ref[:, h * d_head:(h + 1) * d_head].astype(jnp.bfloat16)
        kh = fused_ref[:, HE + h * d_head: HE + (h + 1) * d_head].astype(jnp.bfloat16)
        vh = fused_ref[:, 2 * HE + h * d_head: 2 * HE + (h + 1) * d_head].astype(jnp.bfloat16)

        # scores = scale * q @ k^T ; series = softmax(scores, axis=-1)
        scores = jnp.dot(qh, kh.T, preferred_element_type=jnp.float32) * scale
        m = jnp.max(scores, axis=-1, keepdims=True)
        e = jnp.exp(scores - m)
        denom = jnp.sum(e, axis=-1, keepdims=True)
        series = e * pl.reciprocal(denom, approx=True)
        series_ref[h, :, :] = series

        # attention output, written directly into the (L, H*E) layout.
        o_ref[:, h * d_head:(h + 1) * d_head] = jnp.dot(
            series.astype(jnp.bfloat16), vh, preferred_element_type=jnp.float32)

        # sigma processing: sigmoid(5*sigma)+1e-5 ; 3**sigma - 1  (kept f32)
        sig = fused_ref[:, 3 * HE + h: 3 * HE + h + 1]          # (L, 1)
        sig = jax.nn.sigmoid(sig * 5.0) + 1e-5
        sig = jnp.exp(sig * ln3) - 1.0
        sigma_ref[h, :, :] = sig                                # (L, 1), no LxL store

        # prior: 1/(sqrt(2*pi)*sigma) * exp(-d^2 / (2*sigma^2))
        inv_sig = pl.reciprocal(sig, approx=True)
        prior_ref[h, :, :] = (inv_sqrt_2pi * inv_sig) * jnp.exp(ndist * (inv_sig * inv_sig))


def anomaly_attention(fused, neg_half_d2, *, n_heads, d_head, scale):
    """fused: (B, L, 3*H*E + H) -> out (B,L,H*E), series/prior (B,H,L,L), sigma (B,H,L,1)."""
    B, L, P = fused.shape
    he = n_heads * d_head
    kern = partial(_anomaly_attn_kernel, scale=scale, n_heads=n_heads, d_head=d_head)
    return pl.pallas_call(
        kern,
        out_shape=(
            jax.ShapeDtypeStruct((B, L, he), jnp.float32),
            jax.ShapeDtypeStruct((B, n_heads, L, L), jnp.float32),
            jax.ShapeDtypeStruct((B, n_heads, L, L), jnp.float32),
            jax.ShapeDtypeStruct((B, n_heads, L, 1), jnp.float32),
        ),
        grid=(B,),
        in_specs=[
            pl.BlockSpec((None, L, P), lambda b: (b, 0, 0)),
            pl.BlockSpec((L, L), lambda b: (0, 0)),
        ],
        out_specs=(
            pl.BlockSpec((None, L, he), lambda b: (b, 0, 0)),
            pl.BlockSpec((None, n_heads, L, L), lambda b: (b, 0, 0, 0)),
            pl.BlockSpec((None, n_heads, L, L), lambda b: (b, 0, 0, 0)),
            pl.BlockSpec((None, n_heads, L, 1), lambda b: (b, 0, 0, 0)),
        ),
        compiler_params=pltpu.CompilerParams(dimension_semantics=("parallel",)),
    )(fused, neg_half_d2)


# ----------------- fused tail: wo + residual + norms + FFN -------------------

def _encoder_tail_kernel(x_ref, a_ref, wo_ref, bo_ref, w1_ref, b1_ref, w2_ref,
                         b2_ref, g1_ref, n1_ref, g2_ref, n2_ref, gf_ref, nf_ref,
                         o_ref, *, apply_final):
    # new_x = attn_out @ wo + bo ; x = x + new_x ; y = x = norm1(x)
    # y = conv2(relu(conv1(y))) ; out = norm2(x + y) ; [optional final norm]
    new_x = jnp.dot(a_ref[...].astype(jnp.bfloat16), wo_ref[...],
                    preferred_element_type=jnp.float32) + bo_ref[...]
    x = x_ref[...] + new_x
    xn = _ln(x, g1_ref[...], n1_ref[...])
    y = jnp.dot(xn.astype(jnp.bfloat16), w1_ref[...],
                preferred_element_type=jnp.float32) + b1_ref[...]
    y = jnp.maximum(y, 0.0)                                    # relu
    y = jnp.dot(y.astype(jnp.bfloat16), w2_ref[...],
                preferred_element_type=jnp.float32) + b2_ref[...]
    out = _ln(xn + y, g2_ref[...], n2_ref[...])
    if apply_final:                                            # Encoder's norm_layer
        out = _ln(out, gf_ref[...], nf_ref[...])
    o_ref[...] = out


def encoder_layer_tail(x, attn_out, lp, norm_final, apply_final):
    N, D = x.shape
    HE = attn_out.shape[1]
    F = lp["w1"].shape[1]
    T = _row_tile(N)
    row = lambda i: (i, 0)
    full = lambda i: (0, 0)
    kern = partial(_encoder_tail_kernel, apply_final=apply_final)
    return pl.pallas_call(
        kern,
        out_shape=jax.ShapeDtypeStruct((N, D), jnp.float32),
        grid=(N // T,),
        in_specs=[
            pl.BlockSpec((T, D), row),     # x
            pl.BlockSpec((T, HE), row),    # attn_out
            pl.BlockSpec((HE, D), full),   # wo
            pl.BlockSpec((1, D), full),    # bo
            pl.BlockSpec((D, F), full),    # w1
            pl.BlockSpec((1, F), full),    # b1
            pl.BlockSpec((F, D), full),    # w2
            pl.BlockSpec((1, D), full),    # b2
            pl.BlockSpec((1, D), full),    # g1
            pl.BlockSpec((1, D), full),    # bn1
            pl.BlockSpec((1, D), full),    # g2
            pl.BlockSpec((1, D), full),    # bn2
            pl.BlockSpec((1, D), full),    # final norm gamma
            pl.BlockSpec((1, D), full),    # final norm beta
        ],
        out_specs=pl.BlockSpec((T, D), row),
        compiler_params=pltpu.CompilerParams(dimension_semantics=("parallel",)),
    )(x, attn_out,
      lp["wo"].astype(jnp.bfloat16), lp["bo"].reshape(1, D),
      lp["w1"].astype(jnp.bfloat16), lp["b1"].reshape(1, F),
      lp["w2"].astype(jnp.bfloat16), lp["b2"].reshape(1, D),
      lp["g1"].reshape(1, D), lp["bn1"].reshape(1, D),
      lp["g2"].reshape(1, D), lp["bn2"].reshape(1, D),
      norm_final["g"].reshape(1, D), norm_final["b"].reshape(1, D))


# --------------------------- parameters & forward ---------------------------

def init_params(key, d_model, n_heads, d_ff, n_layers):
    d_k = d_model // n_heads
    he = d_k * n_heads
    layers = []
    for _ in range(n_layers):
        key, *ks = jax.random.split(key, 10)

        def rnd(k, shape, scale=0.05):
            return jax.random.normal(k, shape, jnp.float32) * scale

        wq, wk, wv = rnd(ks[0], (d_model, he)), rnd(ks[1], (d_model, he)), rnd(ks[2], (d_model, he))
        wsig = rnd(ks[3], (d_model, n_heads))
        layers.append(dict(
            # fused [Wq | Wk | Wv | Wsig] projection weight / bias
            wqkvs=jnp.concatenate([wq, wk, wv, wsig], axis=1),
            bqkvs=jnp.zeros((3 * he + n_heads,), jnp.float32),
            wo=rnd(ks[4], (he, d_model)), bo=jnp.zeros((d_model,), jnp.float32),
            w1=rnd(ks[5], (d_model, d_ff)), b1=rnd(ks[6], (d_ff,), 0.01),
            w2=rnd(ks[7], (d_ff, d_model)), b2=rnd(ks[8], (d_model,), 0.01),
            g1=jnp.ones((d_model,), jnp.float32), bn1=jnp.zeros((d_model,), jnp.float32),
            g2=jnp.ones((d_model,), jnp.float32), bn2=jnp.zeros((d_model,), jnp.float32),
        ))
    norm = dict(g=jnp.ones((d_model,), jnp.float32),
                b=jnp.zeros((d_model,), jnp.float32))
    return dict(layers=layers, norm=norm)


def encoder_forward(x, params, n_heads):
    """Encoder.forward: loop over attn layers, collect series/prior/sigma, final norm."""
    B, L, D = x.shape
    d_k = D // n_heads
    he = n_heads * d_k
    scale = 1.0 / math.sqrt(d_k)
    N = B * L

    # hoisted -|i-j|^2 / 2 matrix (constant across layers / batches / heads)
    idx = jnp.arange(L, dtype=jnp.float32)
    dist = jnp.abs(idx[:, None] - idx[None, :])
    neg_half_d2 = -0.5 * dist * dist

    x_flat = x.reshape(N, D)
    series_list, prior_list, sigma_list = [], [], []
    n_layers = len(params["layers"])
    for li, lp in enumerate(params["layers"]):
        # fused Q/K/V/sigma projection (one launch, one x read)
        fused = fused_projection(x_flat, lp["wqkvs"].astype(jnp.bfloat16), lp["bqkvs"])
        fused = fused.reshape(B, L, 3 * he + n_heads)

        attn_out, series, prior, sigma_col = anomaly_attention(
            fused, neg_half_d2, n_heads=n_heads, d_head=d_k, scale=scale)

        # wo-projection + residual + norm1 + FFN + norm2 (+ final norm on last layer)
        x_flat = encoder_layer_tail(
            x_flat, attn_out.reshape(N, he), lp,
            norm_final=params["norm"], apply_final=(li == n_layers - 1))

        series_list.append(series)
        prior_list.append(prior)
        # reference API returns sigma broadcast to (B, H, L, L); broadcast outside
        # the kernel to avoid LxL store pressure inside attention.
        sigma_list.append(jnp.broadcast_to(sigma_col, (B, n_heads, L, L)))

    return x_flat.reshape(B, L, D), series_list, prior_list, sigma_list


# ---------------------------------- main ------------------------------------

if __name__ == "__main__":
    B, L, d_model, n_heads, d_ff, n_layers = 2, 16, 32, 4, 64, 2

    key = jax.random.PRNGKey(0)
    kx, kp = jax.random.split(key)
    x = jax.random.normal(kx, (B, L, d_model), jnp.float32)
    params = init_params(kp, d_model, n_heads, d_ff, n_layers)

    fwd = jax.jit(encoder_forward, static_argnums=(2,))
    out, series_list, prior_list, sigma_list = fwd(x, params, n_heads)

    jax.block_until_ready(out)
    for t in series_list + prior_list + sigma_list:
        jax.block_until_ready(t)

    assert out.shape == (B, L, d_model)
    assert series_list[0].shape == (B, n_heads, L, L)
    assert prior_list[0].shape == (B, n_heads, L, L)
    assert sigma_list[0].shape == (B, n_heads, L, L)
    print("KERNEL_OK")
</pallas_src>

<mosaic_0001>
module attributes {stable_mosaic.version = 11 : i64} {
  func.func @_fused_proj_kernel(%arg0: i32, %arg1: memref<32x32xf32, #tpu.memory_space<vmem>>, %arg2: memref<32x100xbf16, #tpu.memory_space<vmem>>, %arg3: memref<1x100xf32, #tpu.memory_space<vmem>>, %arg4: memref<32x100xf32, #tpu.memory_space<vmem>>) attributes {dimension_semantics = [#tpu.dimension_semantics<parallel>], iteration_bounds = array<i64: 1>, scalar_prefetch = 0 : i64, scratch_operands = 0 : i64, tpu.core_type = #tpu.core_type<tc>, window_params = [{transform_indices = @transform_0, window_bounds = array<i64: 32, 32>}, {pipeline_mode = #tpu.pipeline_mode<synchronous>, transform_indices = @transform_1, window_bounds = array<i64: 32, 100>}, {pipeline_mode = #tpu.pipeline_mode<synchronous>, transform_indices = @transform_2, window_bounds = array<i64: 1, 100>}, {transform_indices = @transform_3, window_bounds = array<i64: 32, 100>}]} {
    %c0 = arith.constant 0 : index
    %c0_0 = arith.constant 0 : index
    %0 = vector.load %arg1[%c0, %c0_0] : memref<32x32xf32, #tpu.memory_space<vmem>>, vector<32x32xf32>
    %1 = arith.truncf %0 : vector<32x32xf32> to vector<32x32xbf16>
    %c0_1 = arith.constant 0 : index
    %c0_2 = arith.constant 0 : index
    %2 = vector.load %arg2[%c0_1, %c0_2] : memref<32x100xbf16, #tpu.memory_space<vmem>>, vector<32x100xbf16>
    %cst = arith.constant dense<0.000000e+00> : vector<32x100xf32>
    %3 = tpu.matmul %1, %2, %cst {dimension_numbers = #tpu.dot_dimension_numbers<[1], [0], [0], [1], [0, 0, 1, 1], [], []>} : vector<32x32xbf16>, vector<32x100xbf16>, vector<32x100xf32> -> vector<32x100xf32>
    %c0_3 = arith.constant 0 : index
    %c0_4 = arith.constant 0 : index
    %4 = vector.load %arg3[%c0_3, %c0_4] : memref<1x100xf32, #tpu.memory_space<vmem>>, vector<1x100xf32>
    %5 = vector.broadcast %4 : vector<1x100xf32> to vector<32x100xf32>
    %6 = arith.addf %3, %5 : vector<32x100xf32>
    %c0_5 = arith.constant 0 : index
    %c0_6 = arith.constant 0 : index
    %7 = vector.load %arg4[%c0_5, %c0_6] : memref<32x100xf32, #tpu.memory_space<vmem>>, vector<32x100xf32>
    tpu.vector_store %arg4[%c0_5, %c0_6], %6 {strides = array<i32>} : memref<32x100xf32, #tpu.memory_space<vmem>>, vector<32x100xf32>,
    return
  }
  func.func @transform_0(%arg0: i32) -> (i32, i32) {
    %c0_i32 = arith.constant 0 : i32
    %c0_i32_0 = arith.constant 0 : i32
    return %arg0, %c0_i32 : i32, i32
  }
  func.func @transform_1(%arg0: i32) -> (i32, i32) {
    %c0_i32 = arith.constant 0 : i32
    %c0_i32_0 = arith.constant 0 : i32
    %c0_i32_1 = arith.constant 0 : i32
    return %c0_i32, %c0_i32_0 : i32, i32
  }
  func.func @transform_2(%arg0: i32) -> (i32, i32) {
    %c0_i32 = arith.constant 0 : i32
    %c0_i32_0 = arith.constant 0 : i32
    %c0_i32_1 = arith.constant 0 : i32
    return %c0_i32, %c0_i32_0 : i32, i32
  }
  func.func @transform_3(%arg0: i32) -> (i32, i32) {
    %c0_i32 = arith.constant 0 : i32
    %c0_i32_0 = arith.constant 0 : i32
    return %arg0, %c0_i32 : i32, i32
  }
}

module attributes {stable_mosaic.version = 11 : i64} {
  func.func @_anomaly_attn_kernel(%arg0: i32, %arg1: memref<1x16x100xf32, #tpu.memory_space<vmem>>, %arg2: memref<16x16xf32, #tpu.memory_space<vmem>>, %arg3: memref<1x16x32xf32, #tpu.memory_space<vmem>>, %arg4: memref<1x4x16x16xf32, #tpu.memory_space<vmem>>, %arg5: memref<1x4x16x16xf32, #tpu.memory_space<vmem>>, %arg6: memref<1x4x16x1xf32, #tpu.memory_space<vmem>>) attributes {dimension_semantics = [#tpu.dimension_semantics<parallel>], iteration_bounds = array<i64: 2>, scalar_prefetch = 0 : i64, scratch_operands = 0 : i64, tpu.core_type = #tpu.core_type<tc>, window_params = [{transform_indices = @transform_0, window_bounds = array<i64: 1, 16, 100>}, {pipeline_mode = #tpu.pipeline_mode<synchronous>, transform_indices = @transform_1, window_bounds = array<i64: 16, 16>}, {transform_indices = @transform_2, window_bounds = array<i64: 1, 16, 32>}, {transform_indices = @transform_3, window_bounds = array<i64: 1, 4, 16, 16>}, {transform_indices = @transform_4, window_bounds = array<i64: 1, 4, 16, 16>}, {transform_indices = @transform_5, window_bounds = array<i64: 1, 4, 16, 1>}]} {
    %c0 = arith.constant 0 : index
    %c0_0 = arith.constant 0 : index
    %0 = vector.load %arg2[%c0, %c0_0] : memref<16x16xf32, #tpu.memory_space<vmem>>, vector<16x16xf32>
    %c0_1 = arith.constant 0 : index
    %c0_2 = arith.constant 0 : index
    %c0_3 = arith.constant 0 : index
    %1 = vector.load %arg1[%c0_1, %c0_2, %c0_3] : memref<1x16x100xf32, #tpu.memory_space<vmem>>, vector<1x16x8xf32>
    %2 = vector.shape_cast %1 : vector<1x16x8xf32> to vector<16x8xf32>
    %3 = arith.truncf %2 : vector<16x8xf32> to vector<16x8xbf16>
    %c0_4 = arith.constant 0 : index
    %c0_5 = arith.constant 0 : index
    %c32 = arith.constant 32 : index
    %4 = vector.load %arg1[%c0_4, %c0_5, %c32] : memref<1x16x100xf32, #tpu.memory_space<vmem>>, vector<1x16x8xf32>
    %5 = vector.shape_cast %4 : vector<1x16x8xf32> to vector<16x8xf32>
    %6 = arith.truncf %5 : vector<16x8xf32> to vector<16x8xbf16>
    %c0_6 = arith.constant 0 : index
    %c0_7 = arith.constant 0 : index
    %c64 = arith.constant 64 : index
    %7 = vector.load %arg1[%c0_6, %c0_7, %c64] : memref<1x16x100xf32, #tpu.memory_space<vmem>>, vector<1x16x8xf32>
    %8 = vector.shape_cast %7 : vector<1x16x8xf32> to vector<16x8xf32>
    %9 = arith.truncf %8 : vector<16x8xf32> to vector<16x8xbf16>
    %10 = tpu.transpose %6, [1, 0] : vector<16x8xbf16> -> vector<8x16xbf16>
    %cst = arith.constant dense<0.000000e+00> : vector<16x16xf32>
    %11 = tpu.matmul %3, %10, %cst {dimension_numbers = #tpu.dot_dimension_numbers<[1], [0], [0], [1], [0, 0, 1, 1], [], []>} : vector<16x8xbf16>, vector<8x16xbf16>, vector<16x16xf32> -> vector<16x16xf32>
    %cst_8 = arith.constant 0.353553385 : f32
    %12 = vector.broadcast %cst_8 : f32 to vector<16x16xf32>
    %13 = arith.mulf %11, %12 : vector<16x16xf32>
    %cst_9 = arith.constant dense<0xFF800000> : vector<16xf32>
    %14 = vector.multi_reduction <maximumf>, %13, %cst_9 [1] : vector<16x16xf32> to vector<16xf32>
    %15 = vector.shape_cast %14 : vector<16xf32> to vector<16x1xf32>
    %16 = vector.broadcast %15 : vector<16x1xf32> to vector<16x16xf32>
    %17 = arith.subf %13, %16 : vector<16x16xf32>
    %18 = math.exp %17 : vector<16x16xf32>
    %cst_10 = arith.constant dense<0.000000e+00> : vector<16xf32>
    %19 = vector.multi_reduction <add>, %18, %cst_10 [1] : vector<16x16xf32> to vector<16xf32>
    %20 = vector.shape_cast %19 : vector<16xf32> to vector<16x1xf32>
    %21 = tpu.reciprocal %20 {approx = true} : vector<16x1xf32> -> vector<16x1xf32>
    %22 = vector.broadcast %21 : vector<16x1xf32> to vector<16x16xf32>
    %23 = arith.mulf %18, %22 : vector<16x16xf32>
    %c0_11 = arith.constant 0 : index
    %c0_12 = arith.constant 0 : index
    %c0_13 = arith.constant 0 : index
    %c0_14 = arith.constant 0 : index
    %24 = vector.load %arg4[%c0_11, %c0_12, %c0_13, %c0_14] : memref<1x4x16x16xf32, #tpu.memory_space<vmem>>, vector<1x1x16x16xf32>
    %25 = vector.shape_cast %24 : vector<1x1x16x16xf32> to vector<16x16xf32>
    %26 = vector.shape_cast %23 : vector<16x16xf32> to vector<1x1x16x16xf32>
    tpu.vector_store %arg4[%c0_11, %c0_12, %c0_13, %c0_14], %26 {strides = array<i32>} : memref<1x4x16x16xf32, #tpu.memory_space<vmem>>, vector<1x1x16x16xf32>,
    %27 = arith.truncf %23 : vector<16x16xf32> to vector<16x16xbf16>
    %cst_15 = arith.constant dense<0.000000e+00> : vector<16x8xf32>
    %28 = tpu.matmul %27, %9, %cst_15 {dimension_numbers = #tpu.dot_dimension_numbers<[1], [0], [0], [1], [0, 0, 1, 1], [], []>} : vector<16x16xbf16>, vector<16x8xbf16>, vector<16x8xf32> -> vector<16x8xf32>
    %c0_16 = arith.constant 0 : index
    %c0_17 = arith.constant 0 : index
    %c0_18 = arith.constant 0 : index
    %29 = vector.load %arg3[%c0_16, %c0_17, %c0_18] : memref<1x16x32xf32, #tpu.memory_space<vmem>>, vector<1x16x8xf32>
    %30 = vector.shape_cast %29 : vector<1x16x8xf32> to vector<16x8xf32>
    %31 = vector.shape_cast %28 : vector<16x8xf32> to vector<1x16x8xf32>
    tpu.vector_store %arg3[%c0_16, %c0_17, %c0_18], %31 {strides = array<i32>} : memref<1x16x32xf32, #tpu.memory_space<vmem>>, vector<1x16x8xf32>,
    %c0_19 = arith.constant 0 : index
    %c0_20 = arith.constant 0 : index
    %c96 = arith.constant 96 : index
    %32 = vector.load %arg1[%c0_19, %c0_20, %c96] : memref<1x16x100xf32, #tpu.memory_space<vmem>>, vector<1x16x1xf32>
    %33 = vector.shape_cast %32 : vector<1x16x1xf32> to vector<16x1xf32>
    %cst_21 = arith.constant 5.000000e+00 : f32
    %34 = vector.broadcast %cst_21 : f32 to vector<16x1xf32>
    %35 = arith.mulf %33, %34 : vector<16x1xf32>
    %36 = arith.negf %35 : vector<16x1xf32>
    %37 = math.exp %36 : vector<16x1xf32>
    %cst_22 = arith.constant 1.000000e+00 : f32
    %38 = vector.broadcast %cst_22 : f32 to vector<16x1xf32>
    %39 = arith.addf %38, %37 : vector<16x1xf32>
    %40 = arith.divf %38, %39 : vector<16x1xf32>
    %cst_23 = arith.constant 9.99999974E-6 : f32
    %41 = vector.broadcast %cst_23 : f32 to vector<16x1xf32>
    %42 = arith.addf %40, %41 : vector<16x1xf32>
    %cst_24 = arith.constant 1.09861231 : f32
    %43 = vector.broadcast %cst_24 : f32 to vector<16x1xf32>
    %44 = arith.mulf %42, %43 : vector<16x1xf32>
    %45 = math.exp %44 : vector<16x1xf32>
    %cst_25 = arith.constant 1.000000e+00 : f32
    %46 = vector.broadcast %cst_25 : f32 to vector<16x1xf32>
    %47 = arith.subf %45, %46 : vector<16x1xf32>
    %c0_26 = arith.constant 0 : index
    %c0_27 = arith.constant 0 : index
    %c0_28 = arith.constant 0 : index
    %c0_29 = arith.constant 0 : index
    %48 = vector.load %arg6[%c0_26, %c0_27, %c0_28, %c0_29] : memref<1x4x16x1xf32, #tpu.memory_space<vmem>>, vector<1x1x16x1xf32>
    %49 = vector.shape_cast %48 : vector<1x1x16x1xf32> to vector<16x1xf32>
    %50 = vector.shape_cast %47 : vector<16x1xf32> to vector<1x1x16x1xf32>
    tpu.vector_store %arg6[%c0_26, %c0_27, %c0_28, %c0_29], %50 {strides = array<i32>} : memref<1x4x16x1xf32, #tpu.memory_space<vmem>>, vector<1x1x16x1xf32>,
    %51 = tpu.reciprocal %47 {approx = true} : vector<16x1xf32> -> vector<16x1xf32>
    %cst_30 = arith.constant 0.398942292 : f32
    %52 = vector.broadcast %cst_30 : f32 to vector<16x1xf32>
    %53 = arith.mulf %52, %51 : vector<16x1xf32>
    %54 = arith.mulf %51, %51 : vector<16x1xf32>
    %55 = vector.broadcast %54 : vector<16x1xf32> to vector<16x16xf32>
    %56 = arith.mulf %0, %55 : vector<16x16xf32>
    %57 = math.exp %56 : vector<16x16xf32>
    %58 = vector.broadcast %53 : vector<16x1xf32> to vector<16x16xf32>
    %59 = arith.mulf %58, %57 : vector<16x16xf32>
    %c0_31 = arith.constant 0 : index
    %c0_32 = arith.constant 0 : index
    %c0_33 = arith.constant 0 : index
    %c0_34 = arith.constant 0 : index
    %60 = vector.load %arg5[%c0_31, %c0_32, %c0_33, %c0_34] : memref<1x4x16x16xf32, #tpu.memory_space<vmem>>, vector<1x1x16x16xf32>
    %61 = vector.shape_cast %60 : vector<1x1x16x16xf32> to vector<16x16xf32>
    %62 = vector.shape_cast %59 : vector<16x16xf32> to vector<1x1x16x16xf32>
    tpu.vector_store %arg5[%c0_31, %c0_32, %c0_33, %c0_34], %62 {strides = array<i32>} : memref<1x4x16x16xf32, #tpu.memory_space<vmem>>, vector<1x1x16x16xf32>,
    %c0_35 = arith.constant 0 : index
    %c0_36 = arith.constant 0 : index
    %c8 = arith.constant 8 : index
    %63 = vector.load %arg1[%c0_35, %c0_36, %c8] : memref<1x16x100xf32, #tpu.memory_space<vmem>>, vector<1x16x8xf32>
    %64 = vector.shape_cast %63 : vector<1x16x8xf32> to vector<16x8xf32>
    %65 = arith.truncf %64 : vector<16x8xf32> to vector<16x8xbf16>
    %c0_37 = arith.constant 0 : index
    %c0_38 = arith.constant 0 : index
    %c40 = arith.constant 40 : index
    %66 = vector.load %arg1[%c0_37, %c0_38, %c40] : memref<1x16x100xf32, #tpu.memory_space<vmem>>, vector<1x16x8xf32>
    %67 = vector.shape_cast %66 : vector<1x16x8xf32> to vector<16x8xf32>
    %68 = arith.truncf %67 : vector<16x8xf32> to vector<16x8xbf16>
    %c0_39 = arith.constant 0 : index
    %c0_40 = arith.constant 0 : index
    %c72 = arith.constant 72 : index
    %69 = vector.load %arg1[%c0_39, %c0_40, %c72] : memref<1x16x100xf32, #tpu.memory_space<vmem>>, vector<1x16x8xf32>
    %70 = vector.shape_cast %69 : vector<1x16x8xf32> to vector<16x8xf32>
    %71 = arith.truncf %70 : vector<16x8xf32> to vector<16x8xbf16>
    %72 = tpu.transpose %68, [1, 0] : vector<16x8xbf16> -> vector<8x16xbf16>
    %cst_41 = arith.constant dense<0.000000e+00> : vector<16x16xf32>
    %73 = tpu.matmul %65, %72, %cst_41 {dimension_numbers = #tpu.dot_dimension_numbers<[1], [0], [0], [1], [0, 0, 1, 1], [], []>} : vector<16x8xbf16>, vector<8x16xbf16>, vector<16x16xf32> -> vector<16x16xf32>
    %cst_42 = arith.constant 0.353553385 : f32
    %74 = vector.broadcast %cst_42 : f32 to vector<16x16xf32>
    %75 = arith.mulf %73, %74 : vector<16x16xf32>
    %cst_43 = arith.constant dense<0xFF800000> : vector<16xf32>
    %76 = vector.multi_reduction <maximumf>, %75, %cst_43 [1] : vector<16x16xf32> to vector<16xf32>
    %77 = vector.shape_cast %76 : vector<16xf32> to vector<16x1xf32>
    %78 = vector.broadcast %77 : vector<16x1xf32> to vector<16x16xf32>
    %79 = arith.subf %75, %78 : vector<16x16xf32>
    %80 = math.exp %79 : vector<16x16xf32>
    %cst_44 = arith.constant dense<0.000000e+00> : vector<16xf32>
    %81 = vector.multi_reduction <add>, %80, %cst_44 [1] : vector<16x16xf32> to vector<16xf32>
    %82 = vector.shape_cast %81 : vector<16xf32> to vector<16x1xf32>
    %83 = tpu.reciprocal %82 {approx = true} : vector<16x1xf32> -> vector<16x1xf32>
    %84 = vector.broadcast %83 : vector<16x1xf32> to vector<16x16xf32>
    %85 = arith.mulf %80, %84 : vector<16x16xf32>
    %c0_45 = arith.constant 0 : index
    %c1 = arith.constant 1 : index
    %c0_46 = arith.constant 0 : index
    %c0_47 = arith.constant 0 : index
    %86 = vector.load %arg4[%c0_45, %c1, %c0_46, %c0_47] : memref<1x4x16x16xf32, #tpu.memory_space<vmem>>, vector<1x1x16x16xf32>
    %87 = vector.shape_cast %86 : vector<1x1x16x16xf32> to vector<16x16xf32>
    %88 = vector.shape_cast %85 : vector<16x16xf32> to vector<1x1x16x16xf32>
    tpu.vector_store %arg4[%c0_45, %c1, %c0_46, %c0_47], %88 {strides = array<i32>} : memref<1x4x16x16xf32, #tpu.memory_space<vmem>>, vector<1x1x16x16xf32>,
    %89 = arith.truncf %85 : vector<16x16xf32> to vector<16x16xbf16>
    %cst_48 = arith.constant dense<0.000000e+00> : vector<16x8xf32>
    %90 = tpu.matmul %89, %71, %cst_48 {dimension_numbers = #tpu.dot_dimension_numbers<[1], [0], [0], [1], [0, 0, 1, 1], [], []>} : vector<16x16xbf16>, vector<16x8xbf16>, vector<16x8xf32> -> vector<16x8xf32>
    %c0_49 = arith.constant 0 : index
    %c0_50 = arith.constant 0 : index
    %c8_51 = arith.constant 8 : index
    %91 = vector.load %arg3[%c0_49, %c0_50, %c8_51] : memref<1x16x32xf32, #tpu.memory_space<vmem>>, vector<1x16x8xf32>
    %92 = vector.shape_cast %91 : vector<1x16x8xf32> to vector<16x8xf32>
    %93 = vector.shape_cast %90 : vector<16x8xf32> to vector<1x16x8xf32>
    tpu.vector_store %arg3[%c0_49, %c0_50, %c8_51], %93 {strides = array<i32>} : memref<1x16x32xf32, #tpu.memory_space<vmem>>, vector<1x16x8xf32>,
    %c0_52 = arith.constant 0 : index
    %c0_53 = arith.constant 0 : index
    %c97 = arith.constant 97 : index
    %94 = vector.load %arg1[%c0_52, %c0_53, %c97] : memref<1x16x100xf32, #tpu.memory_space<vmem>>, vector<1x16x1xf32>
    %95 = vector.shape_cast %94 : vector<1x16x1xf32> to vector<16x1xf32>
    %cst_54 = arith.constant 5.000000e+00 : f32
    %96 = vector.broadcast %cst_54 : f32 to vector<16x1xf32>
    %97 = arith.mulf %95, %96 : vector<16x1xf32>
    %98 = arith.negf %97 : vector<16x1xf32>
    %99 = math.exp %98 : vector<16x1xf32>
    %cst_55 = arith.constant 1.000000e+00 : f32
    %100 = vector.broadcast %cst_55 : f32 to vector<16x1xf32>
    %101 = arith.addf %100, %99 : vector<16x1xf32>
    %102 = arith.divf %100, %101 : vector<16x1xf32>
    %cst_56 = arith.constant 9.99999974E-6 : f32
    %103 = vector.broadcast %cst_56 : f32 to vector<16x1xf32>
    %104 = arith.addf %102, %103 : vector<16x1xf32>
    %cst_57 = arith.constant 1.09861231 : f32
    %105 = vector.broadcast %cst_57 : f32 to vector<16x1xf32>
    %106 = arith.mulf %104, %105 : vector<16x1xf32>
    %107 = math.exp %106 : vector<16x1xf32>
    %cst_58 = arith.constant 1.000000e+00 : f32
    %108 = vector.broadcast %cst_58 : f32 to vector<16x1xf32>
    %109 = arith.subf %107, %108 : vector<16x1xf32>
    %c0_59 = arith.constant 0 : index
    %c1_60 = arith.constant 1 : index
    %c0_61 = arith.constant 0 : index
    %c0_62 = arith.constant 0 : index
    %110 = vector.load %arg6[%c0_59, %c1_60, %c0_61, %c0_62] : memref<1x4x16x1xf32, #tpu.memory_space<vmem>>, vector<1x1x16x1xf32>
    %111 = vector.shape_cast %110 : vector<1x1x16x1xf32> to vector<16x1xf32>
    %112 = vector.shape_cast %109 : vector<16x1xf32> to vector<1x1x16x1xf32>
    tpu.vector_store %arg6[%c0_59, %c1_60, %c0_61, %c0_62], %112 {strides = array<i32>} : memref<1x4x16x1xf32, #tpu.memory_space<vmem>>, vector<1x1x16x1xf32>,
    %113 = tpu.reciprocal %109 {approx = true} : vector<16x1xf32> -> vector<16x1xf32>
    %cst_63 = arith.constant 0.398942292 : f32
    %114 = vector.broadcast %cst_63 : f32 to vector<16x1xf32>
    %115 = arith.mulf %114, %113 : vector<16x1xf32>
    %116 = arith.mulf %113, %113 : vector<16x1xf32>
    %117 = vector.broadcast %116 : vector<16x1xf32> to vector<16x16xf32>
    %118 = arith.mulf %0, %117 : vector<16x16xf32>
    %119 = math.exp %118 : vector<16x16xf32>
    %120 = vector.broadcast %115 : vector<16x1xf32> to vector<16x16xf32>
    %121 = arith.mulf %120, %119 : vector<16x16xf32>
    %c0_64 = arith.constant 0 : index
    %c1_65 = arith.constant 1 : index
    %c0_66 = arith.constant 0 : index
    %c0_67 = arith.constant 0 : index
    %122 = vector.load %arg5[%c0_64, %c1_65, %c0_66, %c0_67] : memref<1x4x16x16xf32, #tpu.memory_space<vmem>>, vector<1x1x16x16xf32>
    %123 = vector.shape_cast %122 : vector<1x1x16x16xf32> to vector<16x16xf32>
    %124 = vector.shape_cast %121 : vector<16x16xf32> to vector<1x1x16x16xf32>
    tpu.vector_store %arg5[%c0_64, %c1_65, %c0_66, %c0_67], %124 {strides = array<i32>} : memref<1x4x16x16xf32, #tpu.memory_space<vmem>>, vector<1x1x16x16xf32>,
    %c0_68 = arith.constant 0 : index
    %c0_69 = arith.constant 0 : index
    %c16 = arith.constant 16 : index
    %125 = vector.load %arg1[%c0_68, %c0_69, %c16] : memref<1x16x100xf32, #tpu.memory_space<vmem>>, vector<1x16x8xf32>
    %126 = vector.shape_cast %125 : vector<1x16x8xf32> to vector<16x8xf32>
    %127 = arith.truncf %126 : vector<16x8xf32> to vector<16x8xbf16>
    %c0_70 = arith.constant 0 : index
    %c0_71 = arith.constant 0 : index
    %c48 = arith.constant 48 : index
    %128 = vector.load %arg1[%c0_70, %c0_71, %c48] : memref<1x16x100xf32, #tpu.memory_space<vmem>>, vector<1x16x8xf32>
    %129 = vector.shape_cast %128 : vector<1x16x8xf32> to vector<16x8xf32>
    %130 = arith.truncf %129 : vector<16x8xf32> to vector<16x8xbf16>
    %c0_72 = arith.constant 0 : index
    %c0_73 = arith.constant 0 : index
    %c80 = arith.constant 80 : index
    %131 = vector.load %arg1[%c0_72, %c0_73, %c80] : memref<1x16x100xf32, #tpu.memory_space<vmem>>, vector<1x16x8xf32>
    %132 = vector.shape_cast %131 : vector<1x16x8xf32> to vector<16x8xf32>
    %133 = arith.truncf %132 : vector<16x8xf32> to vector<16x8xbf16>
    %134 = tpu.transpose %130, [1, 0] : vector<16x8xbf16> -> vector<8x16xbf16>
    %cst_74 = arith.constant dense<0.000000e+00> : vector<16x16xf32>
    %135 = tpu.matmul %127, %134, %cst_74 {dimension_numbers = #tpu.dot_dimension_numbers<[1], [0], [0], [1], [0, 0, 1, 1], [], []>} : vector<16x8xbf16>, vector<8x16xbf16>, vector<16x16xf32> -> vector<16x16xf32>
    %cst_75 = arith.constant 0.353553385 : f32
    %136 = vector.broadcast %cst_75 : f32 to vector<16x16xf32>
    %137 = arith.mulf %135, %136 : vector<16x16xf32>
    %cst_76 = arith.constant dense<0xFF800000> : vector<16xf32>
    %138 = vector.multi_reduction <maximumf>, %137, %cst_76 [1] : vector<16x16xf32> to vector<16xf32>
    %139 = vector.shape_cast %138 : vector<16xf32> to vector<16x1xf32>
    %140 = vector.broadcast %139 : vector<16x1xf32> to vector<16x16xf32>
    %141 = arith.subf %137, %140 : vector<16x16xf32>
    %142 = math.exp %141 : vector<16x16xf32>
    %cst_77 = arith.constant dense<0.000000e+00> : vector<16xf32>
    %143 = vector.multi_reduction <add>, %142, %cst_77 [1] : vector<16x16xf32> to vector<16xf32>
    %144 = vector.shape_cast %143 : vector<16xf32> to vector<16x1xf32>
    %145 = tpu.reciprocal %144 {approx = true} : vector<16x1xf32> -> vector<16x1xf32>
    %146 = vector.broadcast %145 : vector<16x1xf32> to vector<16x16xf32>
    %147 = arith.mulf %142, %146 : vector<16x16xf32>
    %c0_78 = arith.constant 0 : index
    %c2 = arith.constant 2 : index
    %c0_79 = arith.constant 0 : index
    %c0_80 = arith.constant 0 : index
    %148 = vector.load %arg4[%c0_78, %c2, %c0_79, %c0_80] : memref<1x4x16x16xf32, #tpu.memory_space<vmem>>, vector<1x1x16x16xf32>
    %149 = vector.shape_cast %148 : vector<1x1x16x16xf32> to vector<16x16xf32>
    %150 = vector.shape_cast %147 : vector<16x16xf32> to vector<1x1x16x16xf32>
    tpu.vector_store %arg4[%c0_78, %c2, %c0_79, %c0_80], %150 {strides = array<i32>} : memref<1x4x16x16xf32, #tpu.memory_space<vmem>>, vector<1x1x16x16xf32>,
    %151 = arith.truncf %147 : vector<16x16xf32> to vector<16x16xbf16>
    %cst_81 = arith.constant dense<0.000000e+00> : vector<16x8xf32>
    %152 = tpu.matmul %151, %133, %cst_81 {dimension_numbers = #tpu.dot_dimension_numbers<[1], [0], [0], [1], [0, 0, 1, 1], [], []>} : vector<16x16xbf16>, vector<16x8xbf16>, vector<16x8xf32> -> vector<16x8xf32>
    %c0_82 = arith.constant 0 : index
    %c0_83 = arith.constant 0 : index
    %c16_84 = arith.constant 16 : index
    %153 = vector.load %arg3[%c0_82, %c0_83, %c16_84] : memref<1x16x32xf32, #tpu.memory_space<vmem>>, vector<1x16x8xf32>
    %154 = vector.shape_cast %153 : vector<1x16x8xf32> to vector<16x8xf32>
    %155 = vector.shape_cast %152 : vector<16x8xf32> to vector<1x16x8xf32>
    tpu.vector_store %arg3[%c0_82, %c0_83, %c16_84], %155 {strides = array<i32>} : memref<1x16x32xf32, #tpu.memory_space<vmem>>, vector<1x16x8xf32>,
    %c0_85 = arith.constant 0 : index
    %c0_86 = arith.constant 0 : index
    %c98 = arith.constant 98 : index
    %156 = vector.load %arg1[%c0_85, %c0_86, %c98] : memref<1x16x100xf32, #tpu.memory_space<vmem>>, vector<1x16x1xf32>
    %157 = vector.shape_cast %156 : vector<1x16x1xf32> to vector<16x1xf32>
    %cst_87 = arith.constant 5.000000e+00 : f32
    %158 = vector.broadcast %cst_87 : f32 to vector<16x1xf32>
    %159 = arith.mulf %157, %158 : vector<16x1xf32>
    %160 = arith.negf %159 : vector<16x1xf32>
    %161 = math.exp %160 : vector<16x1xf32>
    %cst_88 = arith.constant 1.000000e+00 : f32
    %162 = vector.broadcast %cst_88 : f32 to vector<16x1xf32>
    %163 = arith.addf %162, %161 : vector<16x1xf32>
    %164 = arith.divf %162, %163 : vector<16x1xf32>
    %cst_89 = arith.constant 9.99999974E-6 : f32
    %165 = vector.broadcast %cst_89 : f32 to vector<16x1xf32>
    %166 = arith.addf %164, %165 : vector<16x1xf32>
    %cst_90 = arith.constant 1.09861231 : f32
    %167 = vector.broadcast %cst_90 : f32 to vector<16x1xf32>
    %168 = arith.mulf %166, %167 : vector<16x1xf32>
    %169 = math.exp %168 : vector<16x1xf32>
    %cst_91 = arith.constant 1.000000e+00 : f32
    %170 = vector.broadcast %cst_91 : f32 to vector<16x1xf32>
    %171 = arith.subf %169, %170 : vector<16x1xf32>
    %c0_92 = arith.constant 0 : index
    %c2_93 = arith.constant 2 : index
    %c0_94 = arith.constant 0 : index
    %c0_95 = arith.constant 0 : index
    %172 = vector.load %arg6[%c0_92, %c2_93, %c0_94, %c0_95] : memref<1x4x16x1xf32, #tpu.memory_space<vmem>>, vector<1x1x16x1xf32>
    %173 = vector.shape_cast %172 : vector<1x1x16x1xf32> to vector<16x1xf32>
    %174 = vector.shape_cast %171 : vector<16x1xf32> to vector<1x1x16x1xf32>
    tpu.vector_store %arg6[%c0_92, %c2_93, %c0_94, %c0_95], %174 {strides = array<i32>} : memref<1x4x16x1xf32, #tpu.memory_space<vmem>>, vector<1x1x16x1xf32>,
    %175 = tpu.reciprocal %171 {approx = true} : vector<16x1xf32> -> vector<16x1xf32>
    %cst_96 = arith.constant 0.398942292 : f32
    %176 = vector.broadcast %cst_96 : f32 to vector<16x1xf32>
    %177 = arith.mulf %176, %175 : vector<16x1xf32>
    %178 = arith.mulf %175, %175 : vector<16x1xf32>
    %179 = vector.broadcast %178 : vector<16x1xf32> to vector<16x16xf32>
    %180 = arith.mulf %0, %179 : vector<16x16xf32>
    %181 = math.exp %180 : vector<16x16xf32>
    %182 = vector.broadcast %177 : vector<16x1xf32> to vector<16x16xf32>
    %183 = arith.mulf %182, %181 : vector<16x16xf32>
    %c0_97 = arith.constant 0 : index
    %c2_98 = arith.constant 2 : index
    %c0_99 = arith.constant 0 : index
    %c0_100 = arith.constant 0 : index
    %184 = vector.load %arg5[%c0_97, %c2_98, %c0_99, %c0_100] : memref<1x4x16x16xf32, #tpu.memory_space<vmem>>, vector<1x1x16x16xf32>
    %185 = vector.shape_cast %184 : vector<1x1x16x16xf32> to vector<16x16xf32>
    %186 = vector.shape_cast %183 : vector<16x16xf32> to vector<1x1x16x16xf32>
    tpu.vector_store %arg5[%c0_97, %c2_98, %c0_99, %c0_100], %186 {strides = array<i32>} : memref<1x4x16x16xf32, #tpu.memory_space<vmem>>, vector<1x1x16x16xf32>,
    %c0_101 = arith.constant 0 : index
    %c0_102 = arith.constant 0 : index
    %c24 = arith.constant 24 : index
    %187 = vector.load %arg1[%c0_101, %c0_102, %c24] : memref<1x16x100xf32, #tpu.memory_space<vmem>>, vector<1x16x8xf32>
    %188 = vector.shape_cast %187 : vector<1x16x8xf32> to vector<16x8xf32>
    %189 = arith.truncf %188 : vector<16x8xf32> to vector<16x8xbf16>
    %c0_103 = arith.constant 0 : index
    %c0_104 = arith.constant 0 : index
    %c56 = arith.constant 56 : index
    %190 = vector.load %arg1[%c0_103, %c0_104, %c56] : memref<1x16x100xf32, #tpu.memory_space<vmem>>, vector<1x16x8xf32>
    %191 = vector.shape_cast %190 : vector<1x16x8xf32> to vector<16x8xf32>
    %192 = arith.truncf %191 : vector<16x8xf32> to vector<16x8xbf16>
    %c0_105 = arith.constant 0 : index
    %c0_106 = arith.constant 0 : index
    %c88 = arith.constant 88 : index
    %193 = vector.load %arg1[%c0_105, %c0_106, %c88] : memref<1x16x100xf32, #tpu.memory_space<vmem>>, vector<1x16x8xf32>
    %194 = vector.shape_cast %193 : vector<1x16x8xf32> to vector<16x8xf32>
    %195 = arith.truncf %194 : vector<16x8xf32> to vector<16x8xbf16>
    %196 = tpu.transpose %192, [1, 0] : vector<16x8xbf16> -> vector<8x16xbf16>
    %cst_107 = arith.constant dense<0.000000e+00> : vector<16x16xf32>
    %197 = tpu.matmul %189, %196, %cst_107 {dimension_numbers = #tpu.dot_dimension_numbers<[1], [0], [0], [1], [0, 0, 1, 1], [], []>} : vector<16x8xbf16>, vector<8x16xbf16>, vector<16x16xf32> -> vector<16x16xf32>
    %cst_108 = arith.constant 0.353553385 : f32
    %198 = vector.broadcast %cst_108 : f32 to vector<16x16xf32>
    %199 = arith.mulf %197, %198 : vector<16x16xf32>
    %cst_109 = arith.constant dense<0xFF800000> : vector<16xf32>
    %200 = vector.multi_reduction <maximumf>, %199, %cst_109 [1] : vector<16x16xf32> to vector<16xf32>
    %201 = vector.shape_cast %200 : vector<16xf32> to vector<16x1xf32>
    %202 = vector.broadcast %201 : vector<16x1xf32> to vector<16x16xf32>
    %203 = arith.subf %199, %202 : vector<16x16xf32>
    %204 = math.exp %203 : vector<16x16xf32>
    %cst_110 = arith.constant dense<0.000000e+00> : vector<16xf32>
    %205 = vector.multi_reduction <add>, %204, %cst_110 [1] : vector<16x16xf32> to vector<16xf32>
    %206 = vector.shape_cast %205 : vector<16xf32> to vector<16x1xf32>
    %207 = tpu.reciprocal %206 {approx = true} : vector<16x1xf32> -> vector<16x1xf32>
    %208 = vector.broadcast %207 : vector<16x1xf32> to vector<16x16xf32>
    %209 = arith.mulf %204, %208 : vector<16x16xf32>
    %c0_111 = arith.constant 0 : index
    %c3 = arith.constant 3 : index
    %c0_112 = arith.constant 0 : index
    %c0_113 = arith.constant 0 : index
    %210 = vector.load %arg4[%c0_111, %c3, %c0_112, %c0_113] : memref<1x4x16x16xf32, #tpu.memory_space<vmem>>, vector<1x1x16x16xf32>
    %211 = vector.shape_cast %210 : vector<1x1x16x16xf32> to vector<16x16xf32>
    %212 = vector.shape_cast %209 : vector<16x16xf32> to vector<1x1x16x16xf32>
    tpu.vector_store %arg4[%c0_111, %c3, %c0_112, %c0_113], %212 {strides = array<i32>} : memref<1x4x16x16xf32, #tpu.memory_space<vmem>>, vector<1x1x16x16xf32>,
    %213 = arith.truncf %209 : vector<16x16xf32> to vector<16x16xbf16>
    %cst_114 = arith.constant dense<0.000000e+00> : vector<16x8xf32>
    %214 = tpu.matmul %213, %195, %cst_114 {dimension_numbers = #tpu.dot_dimension_numbers<[1], [0], [0], [1], [0, 0, 1, 1], [], []>} : vector<16x16xbf16>, vector<16x8xbf16>, vector<16x8xf32> -> vector<16x8xf32>
    %c0_115 = arith.constant 0 : index
    %c0_116 = arith.constant 0 : index
    %c24_117 = arith.constant 24 : index
    %215 = vector.load %arg3[%c0_115, %c0_116, %c24_117] : memref<1x16x32xf32, #tpu.memory_space<vmem>>, vector<1x16x8xf32>
    %216 = vector.shape_cast %215 : vector<1x16x8xf32> to vector<16x8xf32>
    %217 = vector.shape_cast %214 : vector<16x8xf32> to vector<1x16x8xf32>
    tpu.vector_store %arg3[%c0_115, %c0_116, %c24_117], %217 {strides = array<i32>} : memref<1x16x32xf32, #tpu.memory_space<vmem>>, vector<1x16x8xf32>,
    %c0_118 = arith.constant 0 : index
    %c0_119 = arith.constant 0 : index
    %c99 = arith.constant 99 : index
    %218 = vector.load %arg1[%c0_118, %c0_119, %c99] : memref<1x16x100xf32, #tpu.memory_space<vmem>>, vector<1x16x1xf32>
    %219 = vector.shape_cast %218 : vector<1x16x1xf32> to vector<16x1xf32>
    %cst_120 = arith.constant 5.000000e+00 : f32
    %220 = vector.broadcast %cst_120 : f32 to vector<16x1xf32>
    %221 = arith.mulf %219, %220 : vector<16x1xf32>
    %222 = arith.negf %221 : vector<16x1xf32>
    %223 = math.exp %222 : vector<16x1xf32>
    %cst_121 = arith.constant 1.000000e+00 : f32
    %224 = vector.broadcast %cst_121 : f32 to vector<16x1xf32>
    %225 = arith.addf %224, %223 : vector<16x1xf32>
    %226 = arith.divf %224, %225 : vector<16x1xf32>
    %cst_122 = arith.constant 9.99999974E-6 : f32
    %227 = vector.broadcast %cst_122 : f32 to vector<16x1xf32>
    %228 = arith.addf %226, %227 : vector<16x1xf32>
    %cst_123 = arith.constant 1.09861231 : f32
    %229 = vector.broadcast %cst_123 : f32 to vector<16x1xf32>
    %230 = arith.mulf %228, %229 : vector<16x1xf32>
    %231 = math.exp %230 : vector<16x1xf32>
    %cst_124 = arith.constant 1.000000e+00 : f32
    %232 = vector.broadcast %cst_124 : f32 to vector<16x1xf32>
    %233 = arith.subf %231, %232 : vector<16x1xf32>
    %c0_125 = arith.constant 0 : index
    %c3_126 = arith.constant 3 : index
    %c0_127 = arith.constant 0 : index
    %c0_128 = arith.constant 0 : index
    %234 = vector.load %arg6[%c0_125, %c3_126, %c0_127, %c0_128] : memref<1x4x16x1xf32, #tpu.memory_space<vmem>>, vector<1x1x16x1xf32>
    %235 = vector.shape_cast %234 : vector<1x1x16x1xf32> to vector<16x1xf32>
    %236 = vector.shape_cast %233 : vector<16x1xf32> to vector<1x1x16x1xf32>
    tpu.vector_store %arg6[%c0_125, %c3_126, %c0_127, %c0_128], %236 {strides = array<i32>} : memref<1x4x16x1xf32, #tpu.memory_space<vmem>>, vector<1x1x16x1xf32>,
    %237 = tpu.reciprocal %233 {approx = true} : vector<16x1xf32> -> vector<16x1xf32>
    %cst_129 = arith.constant 0.398942292 : f32
    %238 = vector.broadcast %cst_129 : f32 to vector<16x1xf32>
    %239 = arith.mulf %238, %237 : vector<16x1xf32>
    %240 = arith.mulf %237, %237 : vector<16x1xf32>
    %241 = vector.broadcast %240 : vector<16x1xf32> to vector<16x16xf32>
    %242 = arith.mulf %0, %241 : vector<16x16xf32>
    %243 = math.exp %242 : vector<16x16xf32>
    %244 = vector.broadcast %239 : vector<16x1xf32> to vector<16x16xf32>
    %245 = arith.mulf %244, %243 : vector<16x16xf32>
    %c0_130 = arith.constant 0 : index
    %c3_131 = arith.constant 3 : index
    %c0_132 = arith.constant 0 : index
    %c0_133 = arith.constant 0 : index
    %246 = vector.load %arg5[%c0_130, %c3_131, %c0_132, %c0_133] : memref<1x4x16x16xf32, #tpu.memory_space<vmem>>, vector<1x1x16x16xf32>
    %247 = vector.shape_cast %246 : vector<1x1x16x16xf32> to vector<16x16xf32>
    %248 = vector.shape_cast %245 : vector<16x16xf32> to vector<1x1x16x16xf32>
    tpu.vector_store %arg5[%c0_130, %c3_131, %c0_132, %c0_133], %248 {strides = array<i32>} : memref<1x4x16x16xf32, #tpu.memory_space<vmem>>, vector<1x1x16x16xf32>,
    return
  }
  func.func @transform_0(%arg0: i32) -> (i32, i32, i32) {
    %c0_i32 = arith.constant 0 : i32
    %c0_i32_0 = arith.constant 0 : i32
    %c0_i32_1 = arith.constant 0 : i32
    return %arg0, %c0_i32, %c0_i32_0 : i32, i32, i32
  }
  func.func @transform_1(%arg0: i32) -> (i32, i32) {
    %c0_i32 = arith.constant 0 : i32
    %c0_i32_0 = arith.constant 0 : i32
    %c0_i32_1 = arith.constant 0 : i32
    return %c0_i32, %c0_i32_0 : i32, i32
  }
  func.func @transform_2(%arg0: i32) -> (i32, i32, i32) {
    %c0_i32 = arith.constant 0 : i32
    %c0_i32_0 = arith.constant 0 : i32
    %c0_i32_1 = arith.constant 0 : i32
    return %arg0, %c0_i32, %c0_i32_0 : i32, i32, i32
  }
  func.func @transform_3(%arg0: i32) -> (i32, i32, i32, i32) {
    %c0_i32 = arith.constant 0 : i32
    %c0_i32_0 = arith.constant 0 : i32
    %c0_i32_1 = arith.constant 0 : i32
    %c0_i32_2 = arith.constant 0 : i32
    return %arg0, %c0_i32, %c0_i32_0, %c0_i32_1 : i32, i32, i32, i32
  }
  func.func @transform_4(%arg0: i32) -> (i32, i32, i32, i32) {
    %c0_i32 = arith.constant 0 : i32
    %c0_i32_0 = arith.constant 0 : i32
    %c0_i32_1 = arith.constant 0 : i32
    %c0_i32_2 = arith.constant 0 : i32
    return %arg0, %c0_i32, %c0_i32_0, %c0_i32_1 : i32, i32, i32, i32
  }
  func.func @transform_5(%arg0: i32) -> (i32, i32, i32, i32) {
    %c0_i32 = arith.constant 0 : i32
    %c0_i32_0 = arith.constant 0 : i32
    %c0_i32_1 = arith.constant 0 : i32
    %c0_i32_2 = arith.constant 0 : i32
    return %arg0, %c0_i32, %c0_i32_0, %c0_i32_1 : i32, i32, i32, i32
  }
}

module attributes {stable_mosaic.version = 11 : i64} {
  func.func @_encoder_tail_kernel(%arg0: i32, %arg1: memref<32x32xf32, #tpu.memory_space<vmem>>, %arg2: memref<32x32xf32, #tpu.memory_space<vmem>>, %arg3: memref<32x32xbf16, #tpu.memory_space<vmem>>, %arg4: memref<1x32xf32, #tpu.memory_space<vmem>>, %arg5: memref<32x64xbf16, #tpu.memory_space<vmem>>, %arg6: memref<1x64xf32, #tpu.memory_space<vmem>>, %arg7: memref<64x32xbf16, #tpu.memory_space<vmem>>, %arg8: memref<1x32xf32, #tpu.memory_space<vmem>>, %arg9: memref<1x32xf32, #tpu.memory_space<vmem>>, %arg10: memref<1x32xf32, #tpu.memory_space<vmem>>, %arg11: memref<1x32xf32, #tpu.memory_space<vmem>>, %arg12: memref<1x32xf32, #tpu.memory_space<vmem>>, %arg13: memref<1x32xf32, #tpu.memory_space<vmem>>, %arg14: memref<1x32xf32, #tpu.memory_space<vmem>>, %arg15: memref<32x32xf32, #tpu.memory_space<vmem>>) attributes {dimension_semantics = [#tpu.dimension_semantics<parallel>], iteration_bounds = array<i64: 1>, scalar_prefetch = 0 : i64, scratch_operands = 0 : i64, tpu.core_type = #tpu.core_type<tc>, window_params = [{transform_indices = @transform_0, window_bounds = array<i64: 32, 32>}, {transform_indices = @transform_1, window_bounds = array<i64: 32, 32>}, {pipeline_mode = #tpu.pipeline_mode<synchronous>, transform_indices = @transform_2, window_bounds = array<i64: 32, 32>}, {pipeline_mode = #tpu.pipeline_mode<synchronous>, transform_indices = @transform_3, window_bounds = array<i64: 1, 32>}, {pipeline_mode = #tpu.pipeline_mode<synchronous>, transform_indices = @transform_4, window_bounds = array<i64: 32, 64>}, {pipeline_mode = #tpu.pipeline_mode<synchronous>, transform_indices = @transform_5, window_bounds = array<i64: 1, 64>}, {pipeline_mode = #tpu.pipeline_mode<synchronous>, transform_indices = @transform_6, window_bounds = array<i64: 64, 32>}, {pipeline_mode = #tpu.pipeline_mode<synchronous>, transform_indices = @transform_7, window_bounds = array<i64: 1, 32>}, {pipeline_mode = #tpu.pipeline_mode<synchronous>, transform_indices = @transform_8, window_bounds = array<i64: 1, 32>}, {pipeline_mode = #tpu.pipeline_mode<synchronous>, transform_indices = @transform_9, window_bounds = array<i64: 1, 32>}, {pipeline_mode = #tpu.pipeline_mode<synchronous>, transform_indices = @transform_10, window_bounds = array<i64: 1, 32>}, {pipeline_mode = #tpu.pipeline_mode<synchronous>, transform_indices = @transform_11, window_bounds = array<i64: 1, 32>}, {pipeline_mode = #tpu.pipeline_mode<synchronous>, transform_indices = @transform_12, window_bounds = array<i64: 1, 32>}, {pipeline_mode = #tpu.pipeline_mode<synchronous>, transform_indices = @transform_13, window_bounds = array<i64: 1, 32>}, {transform_indices = @transform_14, window_bounds = array<i64: 32, 32>}]} {
    %c0 = arith.constant 0 : index
    %c0_0 = arith.constant 0 : index
    %0 = vector.load %arg2[%c0, %c0_0] : memref<32x32xf32, #tpu.memory_space<vmem>>, vector<32x32xf32>
    %1 = arith.truncf %0 : vector<32x32xf32> to vector<32x32xbf16>
    %c0_1 = arith.constant 0 : index
    %c0_2 = arith.constant 0 : index
    %2 = vector.load %arg3[%c0_1, %c0_2] : memref<32x32xbf16, #tpu.memory_space<vmem>>, vector<32x32xbf16>
    %cst = arith.constant dense<0.000000e+00> : vector<32x32xf32>
    %3 = tpu.matmul %1, %2, %cst {dimension_numbers = #tpu.dot_dimension_numbers<[1], [0], [0], [1], [0, 0, 1, 1], [], []>} : vector<32x32xbf16>, vector<32x32xbf16>, vector<32x32xf32> -> vector<32x32xf32>
    %c0_3 = arith.constant 0 : index
    %c0_4 = arith.constant 0 : index
    %4 = vector.load %arg4[%c0_3, %c0_4] : memref<1x32xf32, #tpu.memory_space<vmem>>, vector<1x32xf32>
    %5 = vector.broadcast %4 : vector<1x32xf32> to vector<32x32xf32>
    %6 = arith.addf %3, %5 : vector<32x32xf32>
    %c0_5 = arith.constant 0 : index
    %c0_6 = arith.constant 0 : index
    %7 = vector.load %arg1[%c0_5, %c0_6] : memref<32x32xf32, #tpu.memory_space<vmem>>, vector<32x32xf32>
    %8 = arith.addf %7, %6 : vector<32x32xf32>
    %c0_7 = arith.constant 0 : index
    %c0_8 = arith.constant 0 : index
    %9 = vector.load %arg9[%c0_7, %c0_8] : memref<1x32xf32, #tpu.memory_space<vmem>>, vector<1x32xf32>
    %c0_9 = arith.constant 0 : index
    %c0_10 = arith.constant 0 : index
    %10 = vector.load %arg10[%c0_9, %c0_10] : memref<1x32xf32, #tpu.memory_space<vmem>>, vector<1x32xf32>
    %cst_11 = arith.constant dense<0.000000e+00> : vector<32xf32>
    %11 = vector.multi_reduction <add>, %8, %cst_11 [1] : vector<32x32xf32> to vector<32xf32>
    %12 = vector.shape_cast %11 : vector<32xf32> to vector<32x1xf32>
    %cst_12 = arith.constant 3.200000e+01 : f32
    %13 = vector.broadcast %cst_12 : f32 to vector<32x1xf32>
    %14 = arith.divf %12, %13 : vector<32x1xf32>
    %15 = vector.broadcast %14 : vector<32x1xf32> to vector<32x32xf32>
    %16 = arith.subf %8, %15 : vector<32x32xf32>
    %17 = arith.mulf %16, %16 : vector<32x32xf32>
    %cst_13 = arith.constant dense<0.000000e+00> : vector<32xf32>
    %18 = vector.multi_reduction <add>, %17, %cst_13 [1] : vector<32x32xf32> to vector<32xf32>
    %19 = vector.shape_cast %18 : vector<32xf32> to vector<32x1xf32>
    %cst_14 = arith.constant 3.200000e+01 : f32
    %20 = vector.broadcast %cst_14 : f32 to vector<32x1xf32>
    %21 = arith.divf %19, %20 : vector<32x1xf32>
    %22 = vector.broadcast %14 : vector<32x1xf32> to vector<32x32xf32>
    %23 = arith.subf %8, %22 : vector<32x32xf32>
    %cst_15 = arith.constant 9.99999974E-6 : f32
    %24 = vector.broadcast %cst_15 : f32 to vector<32x1xf32>
    %25 = arith.addf %21, %24 : vector<32x1xf32>
    %26 = math.rsqrt %25 : vector<32x1xf32>
    %27 = vector.broadcast %26 : vector<32x1xf32> to vector<32x32xf32>
    %28 = arith.mulf %23, %27 : vector<32x32xf32>
    %29 = vector.broadcast %9 : vector<1x32xf32> to vector<32x32xf32>
    %30 = arith.mulf %28, %29 : vector<32x32xf32>
    %31 = vector.broadcast %10 : vector<1x32xf32> to vector<32x32xf32>
    %32 = arith.addf %30, %31 : vector<32x32xf32>
    %33 = arith.truncf %32 : vector<32x32xf32> to vector<32x32xbf16>
    %c0_16 = arith.constant 0 : index
    %c0_17 = arith.constant 0 : index
    %34 = vector.load %arg5[%c0_16, %c0_17] : memref<32x64xbf16, #tpu.memory_space<vmem>>, vector<32x64xbf16>
    %cst_18 = arith.constant dense<0.000000e+00> : vector<32x64xf32>
    %35 = tpu.matmul %33, %34, %cst_18 {dimension_numbers = #tpu.dot_dimension_numbers<[1], [0], [0], [1], [0, 0, 1, 1], [], []>} : vector<32x32xbf16>, vector<32x64xbf16>, vector<32x64xf32> -> vector<32x64xf32>
    %c0_19 = arith.constant 0 : index
    %c0_20 = arith.constant 0 : index
    %36 = vector.load %arg6[%c0_19, %c0_20] : memref<1x64xf32, #tpu.memory_space<vmem>>, vector<1x64xf32>
    %37 = vector.broadcast %36 : vector<1x64xf32> to vector<32x64xf32>
    %38 = arith.addf %35, %37 : vector<32x64xf32>
    %cst_21 = arith.constant 0.000000e+00 : f32
    %39 = vector.broadcast %cst_21 : f32 to vector<32x64xf32>
    %40 = arith.maximumf %38, %39 : vector<32x64xf32>
    %41 = arith.truncf %40 : vector<32x64xf32> to vector<32x64xbf16>
    %c0_22 = arith.constant 0 : index
    %c0_23 = arith.constant 0 : index
    %42 = vector.load %arg7[%c0_22, %c0_23] : memref<64x32xbf16, #tpu.memory_space<vmem>>, vector<64x32xbf16>
    %cst_24 = arith.constant dense<0.000000e+00> : vector<32x32xf32>
    %43 = tpu.matmul %41, %42, %cst_24 {dimension_numbers = #tpu.dot_dimension_numbers<[1], [0], [0], [1], [0, 0, 1, 1], [], []>} : vector<32x64xbf16>, vector<64x32xbf16>, vector<32x32xf32> -> vector<32x32xf32>
    %c0_25 = arith.constant 0 : index
    %c0_26 = arith.constant 0 : index
    %44 = vector.load %arg8[%c0_25, %c0_26] : memref<1x32xf32, #tpu.memory_space<vmem>>, vector<1x32xf32>
    %45 = vector.broadcast %44 : vector<1x32xf32> to vector<32x32xf32>
    %46 = arith.addf %43, %45 : vector<32x32xf32>
    %47 = arith.addf %32, %46 : vector<32x32xf32>
    %c0_27 = arith.constant 0 : index
    %c0_28 = arith.constant 0 : index
    %48 = vector.load %arg11[%c0_27, %c0_28] : memref<1x32xf32, #tpu.memory_space<vmem>>, vector<1x32xf32>
    %c0_29 = arith.constant 0 : index
    %c0_30 = arith.constant 0 : index
    %49 = vector.load %arg12[%c0_29, %c0_30] : memref<1x32xf32, #tpu.memory_space<vmem>>, vector<1x32xf32>
    %cst_31 = arith.constant dense<0.000000e+00> : vector<32xf32>
    %50 = vector.multi_reduction <add>, %47, %cst_31 [1] : vector<32x32xf32> to vector<32xf32>
    %51 = vector.shape_cast %50 : vector<32xf32> to vector<32x1xf32>
    %cst_32 = arith.constant 3.200000e+01 : f32
    %52 = vector.broadcast %cst_32 : f32 to vector<32x1xf32>
    %53 = arith.divf %51, %52 : vector<32x1xf32>
    %54 = vector.broadcast %53 : vector<32x1xf32> to vector<32x32xf32>
    %55 = arith.subf %47, %54 : vector<32x32xf32>
    %56 = arith.mulf %55, %55 : vector<32x32xf32>
    %cst_33 = arith.constant dense<0.000000e+00> : vector<32xf32>
    %57 = vector.multi_reduction <add>, %56, %cst_33 [1] : vector<32x32xf32> to vector<32xf32>
    %58 = vector.shape_cast %57 : vector<32xf32> to vector<32x1xf32>
    %cst_34 = arith.constant 3.200000e+01 : f32
    %59 = vector.broadcast %cst_34 : f32 to vector<32x1xf32>
    %60 = arith.divf %58, %59 : vector<32x1xf32>
    %61 = vector.broadcast %53 : vector<32x1xf32> to vector<32x32xf32>
    %62 = arith.subf %47, %61 : vector<32x32xf32>
    %cst_35 = arith.constant 9.99999974E-6 : f32
    %63 = vector.broadcast %cst_35 : f32 to vector<32x1xf32>
    %64 = arith.addf %60, %63 : vector<32x1xf32>
    %65 = math.rsqrt %64 : vector<32x1xf32>
    %66 = vector.broadcast %65 : vector<32x1xf32> to vector<32x32xf32>
    %67 = arith.mulf %62, %66 : vector<32x32xf32>
    %68 = vector.broadcast %48 : vector<1x32xf32> to vector<32x32xf32>
    %69 = arith.mulf %67, %68 : vector<32x32xf32>
    %70 = vector.broadcast %49 : vector<1x32xf32> to vector<32x32xf32>
    %71 = arith.addf %69, %70 : vector<32x32xf32>
    %c0_36 = arith.constant 0 : index
    %c0_37 = arith.constant 0 : index
    %72 = vector.load %arg15[%c0_36, %c0_37] : memref<32x32xf32, #tpu.memory_space<vmem>>, vector<32x32xf32>
    tpu.vector_store %arg15[%c0_36, %c0_37], %71 {strides = array<i32>} : memref<32x32xf32, #tpu.memory_space<vmem>>, vector<32x32xf32>,
    return
  }
  func.func @transform_0(%arg0: i32) -> (i32, i32) {
    %c0_i32 = arith.constant 0 : i32
    %c0_i32_0 = arith.constant 0 : i32
    return %arg0, %c0_i32 : i32, i32
  }
  func.func @transform_1(%arg0: i32) -> (i32, i32) {
    %c0_i32 = arith.constant 0 : i32
    %c0_i32_0 = arith.constant 0 : i32
    return %arg0, %c0_i32 : i32, i32
  }
  func.func @transform_2(%arg0: i32) -> (i32, i32) {
    %c0_i32 = arith.constant 0 : i32
    %c0_i32_0 = arith.constant 0 : i32
    %c0_i32_1 = arith.constant 0 : i32
    return %c0_i32, %c0_i32_0 : i32, i32
  }
  func.func @transform_3(%arg0: i32) -> (i32, i32) {
    %c0_i32 = arith.constant 0 : i32
    %c0_i32_0 = arith.constant 0 : i32
    %c0_i32_1 = arith.constant 0 : i32
    return %c0_i32, %c0_i32_0 : i32, i32
  }
  func.func @transform_4(%arg0: i32) -> (i32, i32) {
    %c0_i32 = arith.constant 0 : i32
    %c0_i32_0 = arith.constant 0 : i32
    %c0_i32_1 = arith.constant 0 : i32
    return %c0_i32, %c0_i32_0 : i32, i32
  }
  func.func @transform_5(%arg0: i32) -> (i32, i32) {
    %c0_i32 = arith.constant 0 : i32
    %c0_i32_0 = arith.constant 0 : i32
    %c0_i32_1 = arith.constant 0 : i32
    return %c0_i32, %c0_i32_0 : i32, i32
  }
  func.func @transform_6(%arg0: i32) -> (i32, i32) {
    %c0_i32 = arith.constant 0 : i32
    %c0_i32_0 = arith.constant 0 : i32
    %c0_i32_1 = arith.constant 0 : i32
    return %c0_i32, %c0_i32_0 : i32, i32
  }
  func.func @transform_7(%arg0: i32) -> (i32, i32) {
    %c0_i32 = arith.constant 0 : i32
    %c0_i32_0 = arith.constant 0 : i32
    %c0_i32_1 = arith.constant 0 : i32
    return %c0_i32, %c0_i32_0 : i32, i32
  }
  func.func @transform_8(%arg0: i32) -> (i32, i32) {
    %c0_i32 = arith.constant 0 : i32
    %c0_i32_0 = arith.constant 0 : i32
    %c0_i32_1 = arith.constant 0 : i32
    return %c0_i32, %c0_i32_0 : i32, i32
  }
  func.func @transform_9(%arg0: i32) -> (i32, i32) {
    %c0_i32 = arith.constant 0 : i32
    %c0_i32_0 = arith.constant 0 : i32
    %c0_i32_1 = arith.constant 0 : i32
    return %c0_i32, %c0_i32_0 : i32, i32
  }
  func.func @transform_10(%arg0: i32) -> (i32, i32) {
    %c0_i32 = arith.constant 0 : i32
    %c0_i32_0 = arith.constant 0 : i32
    %c0_i32_1 = arith.constant 0 : i32
    return %c0_i32, %c0_i32_0 : i32, i32
  }
  func.func @transform_11(%arg0: i32) -> (i32, i32) {
    %c0_i32 = arith.constant 0 : i32
    %c0_i32_0 = arith.constant 0 : i32
    %c0_i32_1 = arith.constant 0 : i32
    return %c0_i32, %c0_i32_0 : i32, i32
  }
  func.func @transform_12(%arg0: i32) -> (i32, i32) {
    %c0_i32 = arith.constant 0 : i32
    %c0_i32_0 = arith.constant 0 : i32
    %c0_i32_1 = arith.constant 0 : i32
    return %c0_i32, %c0_i32_0 : i32, i32
  }
  func.func @transform_13(%arg0: i32) -> (i32, i32) {
    %c0_i32 = arith.constant 0 : i32
    %c0_i32_0 = arith.constant 0 : i32
    %c0_i32_1 = arith.constant 0 : i32
    return %c0_i32, %c0_i32_0 : i32, i32
  }
  func.func @transform_14(%arg0: i32) -> (i32, i32) {
    %c0_i32 = arith.constant 0 : i32
    %c0_i32_0 = arith.constant 0 : i32
    return %arg0, %c0_i32 : i32, i32
  }
}

module attributes {stable_mosaic.version = 11 : i64} {
  func.func @_encoder_tail_kernel(%arg0: i32, %arg1: memref<32x32xf32, #tpu.memory_space<vmem>>, %arg2: memref<32x32xf32, #tpu.memory_space<vmem>>, %arg3: memref<32x32xbf16, #tpu.memory_space<vmem>>, %arg4: memref<1x32xf32, #tpu.memory_space<vmem>>, %arg5: memref<32x64xbf16, #tpu.memory_space<vmem>>, %arg6: memref<1x64xf32, #tpu.memory_space<vmem>>, %arg7: memref<64x32xbf16, #tpu.memory_space<vmem>>, %arg8: memref<1x32xf32, #tpu.memory_space<vmem>>, %arg9: memref<1x32xf32, #tpu.memory_space<vmem>>, %arg10: memref<1x32xf32, #tpu.memory_space<vmem>>, %arg11: memref<1x32xf32, #tpu.memory_space<vmem>>, %arg12: memref<1x32xf32, #tpu.memory_space<vmem>>, %arg13: memref<1x32xf32, #tpu.memory_space<vmem>>, %arg14: memref<1x32xf32, #tpu.memory_space<vmem>>, %arg15: memref<32x32xf32, #tpu.memory_space<vmem>>) attributes {dimension_semantics = [#tpu.dimension_semantics<parallel>], iteration_bounds = array<i64: 1>, scalar_prefetch = 0 : i64, scratch_operands = 0 : i64, tpu.core_type = #tpu.core_type<tc>, window_params = [{transform_indices = @transform_0, window_bounds = array<i64: 32, 32>}, {transform_indices = @transform_1, window_bounds = array<i64: 32, 32>}, {pipeline_mode = #tpu.pipeline_mode<synchronous>, transform_indices = @transform_2, window_bounds = array<i64: 32, 32>}, {pipeline_mode = #tpu.pipeline_mode<synchronous>, transform_indices = @transform_3, window_bounds = array<i64: 1, 32>}, {pipeline_mode = #tpu.pipeline_mode<synchronous>, transform_indices = @transform_4, window_bounds = array<i64: 32, 64>}, {pipeline_mode = #tpu.pipeline_mode<synchronous>, transform_indices = @transform_5, window_bounds = array<i64: 1, 64>}, {pipeline_mode = #tpu.pipeline_mode<synchronous>, transform_indices = @transform_6, window_bounds = array<i64: 64, 32>}, {pipeline_mode = #tpu.pipeline_mode<synchronous>, transform_indices = @transform_7, window_bounds = array<i64: 1, 32>}, {pipeline_mode = #tpu.pipeline_mode<synchronous>, transform_indices = @transform_8, window_bounds = array<i64: 1, 32>}, {pipeline_mode = #tpu.pipeline_mode<synchronous>, transform_indices = @transform_9, window_bounds = array<i64: 1, 32>}, {pipeline_mode = #tpu.pipeline_mode<synchronous>, transform_indices = @transform_10, window_bounds = array<i64: 1, 32>}, {pipeline_mode = #tpu.pipeline_mode<synchronous>, transform_indices = @transform_11, window_bounds = array<i64: 1, 32>}, {pipeline_mode = #tpu.pipeline_mode<synchronous>, transform_indices = @transform_12, window_bounds = array<i64: 1, 32>}, {pipeline_mode = #tpu.pipeline_mode<synchronous>, transform_indices = @transform_13, window_bounds = array<i64: 1, 32>}, {transform_indices = @transform_14, window_bounds = array<i64: 32, 32>}]} {
    %c0 = arith.constant 0 : index
    %c0_0 = arith.constant 0 : index
    %0 = vector.load %arg2[%c0, %c0_0] : memref<32x32xf32, #tpu.memory_space<vmem>>, vector<32x32xf32>
    %1 = arith.truncf %0 : vector<32x32xf32> to vector<32x32xbf16>
    %c0_1 = arith.constant 0 : index
    %c0_2 = arith.constant 0 : index
    %2 = vector.load %arg3[%c0_1, %c0_2] : memref<32x32xbf16, #tpu.memory_space<vmem>>, vector<32x32xbf16>
    %cst = arith.constant dense<0.000000e+00> : vector<32x32xf32>
    %3 = tpu.matmul %1, %2, %cst {dimension_numbers = #tpu.dot_dimension_numbers<[1], [0], [0], [1], [0, 0, 1, 1], [], []>} : vector<32x32xbf16>, vector<32x32xbf16>, vector<32x32xf32> -> vector<32x32xf32>
    %c0_3 = arith.constant 0 : index
    %c0_4 = arith.constant 0 : index
    %4 = vector.load %arg4[%c0_3, %c0_4] : memref<1x32xf32, #tpu.memory_space<vmem>>, vector<1x32xf32>
    %5 = vector.broadcast %4 : vector<1x32xf32> to vector<32x32xf32>
    %6 = arith.addf %3, %5 : vector<32x32xf32>
    %c0_5 = arith.constant 0 : index
    %c0_6 = arith.constant 0 : index
    %7 = vector.load %arg1[%c0_5, %c0_6] : memref<32x32xf32, #tpu.memory_space<vmem>>, vector<32x32xf32>
    %8 = arith.addf %7, %6 : vector<32x32xf32>
    %c0_7 = arith.constant 0 : index
    %c0_8 = arith.constant 0 : index
    %9 = vector.load %arg9[%c0_7, %c0_8] : memref<1x32xf32, #tpu.memory_space<vmem>>, vector<1x32xf32>
    %c0_9 = arith.constant 0 : index
    %c0_10 = arith.constant 0 : index
    %10 = vector.load %arg10[%c0_9, %c0_10] : memref<1x32xf32, #tpu.memory_space<vmem>>, vector<1x32xf32>
    %cst_11 = arith.constant dense<0.000000e+00> : vector<32xf32>
    %11 = vector.multi_reduction <add>, %8, %cst_11 [1] : vector<32x32xf32> to vector<32xf32>
    %12 = vector.shape_cast %11 : vector<32xf32> to vector<32x1xf32>
    %cst_12 = arith.constant 3.200000e+01 : f32
    %13 = vector.broadcast %cst_12 : f32 to vector<32x1xf32>
    %14 = arith.divf %12, %13 : vector<32x1xf32>
    %15 = vector.broadcast %14 : vector<32x1xf32> to vector<32x32xf32>
    %16 = arith.subf %8, %15 : vector<32x32xf32>
    %17 = arith.mulf %16, %16 : vector<32x32xf32>
    %cst_13 = arith.constant dense<0.000000e+00> : vector<32xf32>
    %18 = vector.multi_reduction <add>, %17, %cst_13 [1] : vector<32x32xf32> to vector<32xf32>
    %19 = vector.shape_cast %18 : vector<32xf32> to vector<32x1xf32>
    %cst_14 = arith.constant 3.200000e+01 : f32
    %20 = vector.broadcast %cst_14 : f32 to vector<32x1xf32>
    %21 = arith.divf %19, %20 : vector<32x1xf32>
    %22 = vector.broadcast %14 : vector<32x1xf32> to vector<32x32xf32>
    %23 = arith.subf %8, %22 : vector<32x32xf32>
    %cst_15 = arith.constant 9.99999974E-6 : f32
    %24 = vector.broadcast %cst_15 : f32 to vector<32x1xf32>
    %25 = arith.addf %21, %24 : vector<32x1xf32>
    %26 = math.rsqrt %25 : vector<32x1xf32>
    %27 = vector.broadcast %26 : vector<32x1xf32> to vector<32x32xf32>
    %28 = arith.mulf %23, %27 : vector<32x32xf32>
    %29 = vector.broadcast %9 : vector<1x32xf32> to vector<32x32xf32>
    %30 = arith.mulf %28, %29 : vector<32x32xf32>
    %31 = vector.broadcast %10 : vector<1x32xf32> to vector<32x32xf32>
    %32 = arith.addf %30, %31 : vector<32x32xf32>
    %33 = arith.truncf %32 : vector<32x32xf32> to vector<32x32xbf16>
    %c0_16 = arith.constant 0 : index
    %c0_17 = arith.constant 0 : index
    %34 = vector.load %arg5[%c0_16, %c0_17] : memref<32x64xbf16, #tpu.memory_space<vmem>>, vector<32x64xbf16>
    %cst_18 = arith.constant dense<0.000000e+00> : vector<32x64xf32>
    %35 = tpu.matmul %33, %34, %cst_18 {dimension_numbers = #tpu.dot_dimension_numbers<[1], [0], [0], [1], [0, 0, 1, 1], [], []>} : vector<32x32xbf16>, vector<32x64xbf16>, vector<32x64xf32> -> vector<32x64xf32>
    %c0_19 = arith.constant 0 : index
    %c0_20 = arith.constant 0 : index
    %36 = vector.load %arg6[%c0_19, %c0_20] : memref<1x64xf32, #tpu.memory_space<vmem>>, vector<1x64xf32>
    %37 = vector.broadcast %36 : vector<1x64xf32> to vector<32x64xf32>
    %38 = arith.addf %35, %37 : vector<32x64xf32>
    %cst_21 = arith.constant 0.000000e+00 : f32
    %39 = vector.broadcast %cst_21 : f32 to vector<32x64xf32>
    %40 = arith.maximumf %38, %39 : vector<32x64xf32>
    %41 = arith.truncf %40 : vector<32x64xf32> to vector<32x64xbf16>
    %c0_22 = arith.constant 0 : index
    %c0_23 = arith.constant 0 : index
    %42 = vector.load %arg7[%c0_22, %c0_23] : memref<64x32xbf16, #tpu.memory_space<vmem>>, vector<64x32xbf16>
    %cst_24 = arith.constant dense<0.000000e+00> : vector<32x32xf32>
    %43 = tpu.matmul %41, %42, %cst_24 {dimension_numbers = #tpu.dot_dimension_numbers<[1], [0], [0], [1], [0, 0, 1, 1], [], []>} : vector<32x64xbf16>, vector<64x32xbf16>, vector<32x32xf32> -> vector<32x32xf32>
    %c0_25 = arith.constant 0 : index
    %c0_26 = arith.constant 0 : index
    %44 = vector.load %arg8[%c0_25, %c0_26] : memref<1x32xf32, #tpu.memory_space<vmem>>, vector<1x32xf32>
    %45 = vector.broadcast %44 : vector<1x32xf32> to vector<32x32xf32>
    %46 = arith.addf %43, %45 : vector<32x32xf32>
    %47 = arith.addf %32, %46 : vector<32x32xf32>
    %c0_27 = arith.constant 0 : index
    %c0_28 = arith.constant 0 : index
    %48 = vector.load %arg11[%c0_27, %c0_28] : memref<1x32xf32, #tpu.memory_space<vmem>>, vector<1x32xf32>
    %c0_29 = arith.constant 0 : index
    %c0_30 = arith.constant 0 : index
    %49 = vector.load %arg12[%c0_29, %c0_30] : memref<1x32xf32, #tpu.memory_space<vmem>>, vector<1x32xf32>
    %cst_31 = arith.constant dense<0.000000e+00> : vector<32xf32>
    %50 = vector.multi_reduction <add>, %47, %cst_31 [1] : vector<32x32xf32> to vector<32xf32>
    %51 = vector.shape_cast %50 : vector<32xf32> to vector<32x1xf32>
    %cst_32 = arith.constant 3.200000e+01 : f32
    %52 = vector.broadcast %cst_32 : f32 to vector<32x1xf32>
    %53 = arith.divf %51, %52 : vector<32x1xf32>
    %54 = vector.broadcast %53 : vector<32x1xf32> to vector<32x32xf32>
    %55 = arith.subf %47, %54 : vector<32x32xf32>
    %56 = arith.mulf %55, %55 : vector<32x32xf32>
    %cst_33 = arith.constant dense<0.000000e+00> : vector<32xf32>
    %57 = vector.multi_reduction <add>, %56, %cst_33 [1] : vector<32x32xf32> to vector<32xf32>
    %58 = vector.shape_cast %57 : vector<32xf32> to vector<32x1xf32>
    %cst_34 = arith.constant 3.200000e+01 : f32
    %59 = vector.broadcast %cst_34 : f32 to vector<32x1xf32>
    %60 = arith.divf %58, %59 : vector<32x1xf32>
    %61 = vector.broadcast %53 : vector<32x1xf32> to vector<32x32xf32>
    %62 = arith.subf %47, %61 : vector<32x32xf32>
    %cst_35 = arith.constant 9.99999974E-6 : f32
    %63 = vector.broadcast %cst_35 : f32 to vector<32x1xf32>
    %64 = arith.addf %60, %63 : vector<32x1xf32>
    %65 = math.rsqrt %64 : vector<32x1xf32>
    %66 = vector.broadcast %65 : vector<32x1xf32> to vector<32x32xf32>
    %67 = arith.mulf %62, %66 : vector<32x32xf32>
    %68 = vector.broadcast %48 : vector<1x32xf32> to vector<32x32xf32>
    %69 = arith.mulf %67, %68 : vector<32x32xf32>
    %70 = vector.broadcast %49 : vector<1x32xf32> to vector<32x32xf32>
    %71 = arith.addf %69, %70 : vector<32x32xf32>
    %c0_36 = arith.constant 0 : index
    %c0_37 = arith.constant 0 : index
    %72 = vector.load %arg13[%c0_36, %c0_37] : memref<1x32xf32, #tpu.memory_space<vmem>>, vector<1x32xf32>
    %c0_38 = arith.constant 0 : index
    %c0_39 = arith.constant 0 : index
    %73 = vector.load %arg14[%c0_38, %c0_39] : memref<1x32xf32, #tpu.memory_space<vmem>>, vector<1x32xf32>
    %cst_40 = arith.constant dense<0.000000e+00> : vector<32xf32>
    %74 = vector.multi_reduction <add>, %71, %cst_40 [1] : vector<32x32xf32> to vector<32xf32>
    %75 = vector.shape_cast %74 : vector<32xf32> to vector<32x1xf32>
    %cst_41 = arith.constant 3.200000e+01 : f32
    %76 = vector.broadcast %cst_41 : f32 to vector<32x1xf32>
    %77 = arith.divf %75, %76 : vector<32x1xf32>
    %78 = vector.broadcast %77 : vector<32x1xf32> to vector<32x32xf32>
    %79 = arith.subf %71, %78 : vector<32x32xf32>
    %80 = arith.mulf %79, %79 : vector<32x32xf32>
    %cst_42 = arith.constant dense<0.000000e+00> : vector<32xf32>
    %81 = vector.multi_reduction <add>, %80, %cst_42 [1] : vector<32x32xf32> to vector<32xf32>
    %82 = vector.shape_cast %81 : vector<32xf32> to vector<32x1xf32>
    %cst_43 = arith.constant 3.200000e+01 : f32
    %83 = vector.broadcast %cst_43 : f32 to vector<32x1xf32>
    %84 = arith.divf %82, %83 : vector<32x1xf32>
    %85 = vector.broadcast %77 : vector<32x1xf32> to vector<32x32xf32>
    %86 = arith.subf %71, %85 : vector<32x32xf32>
    %cst_44 = arith.constant 9.99999974E-6 : f32
    %87 = vector.broadcast %cst_44 : f32 to vector<32x1xf32>
    %88 = arith.addf %84, %87 : vector<32x1xf32>
    %89 = math.rsqrt %88 : vector<32x1xf32>
    %90 = vector.broadcast %89 : vector<32x1xf32> to vector<32x32xf32>
    %91 = arith.mulf %86, %90 : vector<32x32xf32>
    %92 = vector.broadcast %72 : vector<1x32xf32> to vector<32x32xf32>
    %93 = arith.mulf %91, %92 : vector<32x32xf32>
    %94 = vector.broadcast %73 : vector<1x32xf32> to vector<32x32xf32>
    %95 = arith.addf %93, %94 : vector<32x32xf32>
    %c0_45 = arith.constant 0 : index
    %c0_46 = arith.constant 0 : index
    %96 = vector.load %arg15[%c0_45, %c0_46] : memref<32x32xf32, #tpu.memory_space<vmem>>, vector<32x32xf32>
    tpu.vector_store %arg15[%c0_45, %c0_46], %95 {strides = array<i32>} : memref<32x32xf32, #tpu.memory_space<vmem>>, vector<32x32xf32>,
    return
  }
  func.func @transform_0(%arg0: i32) -> (i32, i32) {
    %c0_i32 = arith.constant 0 : i32
    %c0_i32_0 = arith.constant 0 : i32
    return %arg0, %c0_i32 : i32, i32
  }
  func.func @transform_1(%arg0: i32) -> (i32, i32) {
    %c0_i32 = arith.constant 0 : i32
    %c0_i32_0 = arith.constant 0 : i32
    return %arg0, %c0_i32 : i32, i32
  }
  func.func @transform_2(%arg0: i32) -> (i32, i32) {
    %c0_i32 = arith.constant 0 : i32
    %c0_i32_0 = arith.constant 0 : i32
    %c0_i32_1 = arith.constant 0 : i32
    return %c0_i32, %c0_i32_0 : i32, i32
  }
  func.func @transform_3(%arg0: i32) -> (i32, i32) {
    %c0_i32 = arith.constant 0 : i32
    %c0_i32_0 = arith.constant 0 : i32
    %c0_i32_1 = arith.constant 0 : i32
    return %c0_i32, %c0_i32_0 : i32, i32
  }
  func.func @transform_4(%arg0: i32) -> (i32, i32) {
    %c0_i32 = arith.constant 0 : i32
    %c0_i32_0 = arith.constant 0 : i32
    %c0_i32_1 = arith.constant 0 : i32
    return %c0_i32, %c0_i32_0 : i32, i32
  }
  func.func @transform_5(%arg0: i32) -> (i32, i32) {
    %c0_i32 = arith.constant 0 : i32
    %c0_i32_0 = arith.constant 0 : i32
    %c0_i32_1 = arith.constant 0 : i32
    return %c0_i32, %c0_i32_0 : i32, i32
  }
  func.func @transform_6(%arg0: i32) -> (i32, i32) {
    %c0_i32 = arith.constant 0 : i32
    %c0_i32_0 = arith.constant 0 : i32
    %c0_i32_1 = arith.constant 0 : i32
    return %c0_i32, %c0_i32_0 : i32, i32
  }
  func.func @transform_7(%arg0: i32) -> (i32, i32) {
    %c0_i32 = arith.constant 0 : i32
    %c0_i32_0 = arith.constant 0 : i32
    %c0_i32_1 = arith.constant 0 : i32
    return %c0_i32, %c0_i32_0 : i32, i32
  }
  func.func @transform_8(%arg0: i32) -> (i32, i32) {
    %c0_i32 = arith.constant 0 : i32
    %c0_i32_0 = arith.constant 0 : i32
    %c0_i32_1 = arith.constant 0 : i32
    return %c0_i32, %c0_i32_0 : i32, i32
  }
  func.func @transform_9(%arg0: i32) -> (i32, i32) {
    %c0_i32 = arith.constant 0 : i32
    %c0_i32_0 = arith.constant 0 : i32
    %c0_i32_1 = arith.constant 0 : i32
    return %c0_i32, %c0_i32_0 : i32, i32
  }
  func.func @transform_10(%arg0: i32) -> (i32, i32) {
    %c0_i32 = arith.constant 0 : i32
    %c0_i32_0 = arith.constant 0 : i32
    %c0_i32_1 = arith.constant 0 : i32
    return %c0_i32, %c0_i32_0 : i32, i32
  }
  func.func @transform_11(%arg0: i32) -> (i32, i32) {
    %c0_i32 = arith.constant 0 : i32
    %c0_i32_0 = arith.constant 0 : i32
    %c0_i32_1 = arith.constant 0 : i32
    return %c0_i32, %c0_i32_0 : i32, i32
  }
  func.func @transform_12(%arg0: i32) -> (i32, i32) {
    %c0_i32 = arith.constant 0 : i32
    %c0_i32_0 = arith.constant 0 : i32
    %c0_i32_1 = arith.constant 0 : i32
    return %c0_i32, %c0_i32_0 : i32, i32
  }
  func.func @transform_13(%arg0: i32) -> (i32, i32) {
    %c0_i32 = arith.constant 0 : i32
    %c0_i32_0 = arith.constant 0 : i32
    %c0_i32_1 = arith.constant 0 : i32
    return %c0_i32, %c0_i32_0 : i32, i32
  }
  func.func @transform_14(%arg0: i32) -> (i32, i32) {
    %c0_i32 = arith.constant 0 : i32
    %c0_i32_0 = arith.constant 0 : i32
    return %arg0, %c0_i32 : i32, i32
  }
}

</mosaic_0001>

<bundles_post_ra>
// kernel: encoder_forward.6
= control target key start
LH: loop header
LB: loop body
LE: loop exit
PB: predicated region body
PF: predicated region fallthrough
CT: control target
= control target key end

     0   :  { %vm44_vm0 = vcmask 261120   ;;  %vm100_vm1 = vcmask 818176   ;;  %s181_s1 = inlined_call_operand.vmem [shape: bf16[32,100], index: 1, kind: input, shape index: {}]   ;;  %s182_s0 = inlined_call_operand.vmem [shape: f32[32,32], index: 0, kind: input, shape index: {}]   ;;  %s183_s2 = inlined_call_operand.vmem [shape: f32[1,100], index: 2, kind: input, shape index: {}]   ;;  %s184_s3 = inlined_call_operand.vmem [shape: f32[32,100], index: 3, kind: output, shape index: {}]  }
   0x1   :  { %v126_v0 = vld [vmem:[%s181_s1] sm:$0xff]   ;;  %v127_v1 = vld [vmem:[%s181_s1 + $0x8] sm:$0xff]   ;;  %v17_v5 = vld [vmem:[%s182_s0 + $0x10] sm:$0xff] }
   0x2   :  { %118 = vmatprep.subr.bf16.mxu0 %v126_v0  ;;  %v15_v2 = vld [vmem:[%s182_s0] sm:$0xff]  ;;  %v16_v3 = vld [vmem:[%s182_s0 + $0x8] sm:$0xff]  ;;  %v18_v6 = vld [vmem:[%s182_s0 + $0x18] sm:$0xff] }
   0x3   :  { %119 = vmatpush3.bf16.msra.mxu0 %v126_v0  ;;  %v19_v4 = vpack.c.bf16 %v16_v3, %v15_v2  ;;  %v20_v7 = vpack.c.bf16 %v18_v6, %v17_v5  ;;  %v109_v8 = vld [vmem:[%s183_s2] ss:$0 sm:$0xff] }
   0x4   :  { %120 = vmatprep.subr.bf16.mxu0 %v127_v1 }
   0x5   :  { %122 = vmatprep.mubr.msk.bf16.mxu0 %vm44_vm0, %v19_v4 }
   0x7   :  { %121 = vmatpush3.bf16.msra.mxu0 %v127_v1 }
   0xa   :  { %123 = vmatmul.mubr.msk.bf16.vlgmr.msra.gmra.mrb[0].mxu0 %vm44_vm0, %v20_v7 }
  0xdd   :  { %v124_v9 = vpop.f32.mrb[0].mxu0 }
  0xde   :  { %v94_v10 = vadd.f32 %v124_v9, %v109_v8  ;;  %v85_v11 = vpop.f32.mrb[1].mxu0 }
  0xdf   :  { %v86_v12 = vadd.f32 %v109_v8, %v85_v11  ;;  %v125_v13 = vpop.f32.mrb[2].mxu0 }
  0xe0   :  { %103 = vst.msk [vmem:[%s184_s3 + $0x10] sm:$0xff] %vm100_vm1, %v94_v10  ;;  %v97_v14 = vadd.f32 %v125_v13, %v109_v8  ;;  %v88_v15 = vpop.f32.mrb[3].mxu0 }
  0xe1   :  { %101 = vst.msk [vmem:[%s184_s3] sm:$0xff] %vm100_vm1, %v86_v12  ;;  %v89_v16 = vadd.f32 %v109_v8, %v88_v15 }
  0xe2   :  { %104 = vst.msk [vmem:[%s184_s3 + $0x18] sm:$0xff] %vm100_vm1, %v97_v14 }
  0xe3   :  { %102 = vst.msk [vmem:[%s184_s3 + $0x8] sm:$0xff] %vm100_vm1, %v89_v16 }

// kernel: encoder_forward.7
= control target key start
LH: loop header
LB: loop body
LE: loop exit
PB: predicated region body
PF: predicated region fallthrough
CT: control target
= control target key end

     0   :  { %11 = vsyncpa [#allocation3], 0  ;;  %s2083_s0 = inlined_call_operand.vmem [shape: f32[2,16,100], index: 0, kind: input, shape index: {}]   ;;  %s2084_s1 = inlined_call_operand.vmem [shape: f32[16,16], index: 1, kind: input, shape index: {}]   ;;  %s2085_s2 = inlined_call_operand.vmem [shape: f32[2,16,32], index: 2, kind: output, shape index: {0}]   ;;  %s2086_s3 = inlined_call_operand.hbm [shape: f32[2,4,16,16], index: 3, kind: output, shape index: {1}]   ;;  %s2087_s4 = inlined_call_operand.hbm [shape: f32[2,4,16,16], index: 4, kind: output, shape index: {2}]   ;;  %s2088_s5 = inlined_call_operand.vmem [shape: f32[2,4,16,1], index: 5, kind: output, shape index: {3}]  }
   0x1   :  { %13 = vsyncpa [#allocation3 + $0x1], 0 }
   0x2   :  { %14 = vsyncpa [#allocation5], 0 }
   0x3   :  { %16 = vsyncpa [#allocation5 + $0x1], 0  ;;  %s1732_s18 = smov 0   ;;  %s1734_s19 = smov 0  }
   0x4   :  { %s1736_s20 = smov 0   ;;  %s1738_s21 = smov 0  }
   0x5 LB: > { %s1753_s22 = sadd.s32 4294967295, %s1673_s21   ;;  %s1305_s23 = sadd.s32 4294967294, %s1673_s21   ;;  %s1673_s21 = sphi %s1738_s21, %s2097_s21   ;;  %s1669_s20 = sphi %s1736_s20, %s2096_s20   ;;  %s1665_s19 = sphi %s1734_s19, %s2095_s19   ;;  %s1661_s18 = sphi %s1732_s18, %s2094_s18  }
   0x6   : > { %s1757_s24 = sadd.s32 1, %s1673_s21   ;;  %s102_s25 = sadd.s32 1, %s1669_s20 }
   0x7   : > { %s99_s26 = ssub.s32 %s1673_s21, %s1757_s24  ;;  %p112_p0 = scmp.ne.s32.totalorder %s1669_s20, %s1665_s19 }
   0x8   : > { %p100_p1 = scmp.eq.s32.totalorder %s99_s26, 0  ;;  %p113_p2 = scmp.eq.s32.totalorder %s1753_s22, 1 }
   0x9   : > { %p118_p3 = scmp.ne.s32.totalorder %s1665_s19, %s1661_s18  ;;  %p119_p4 = scmp.eq.s32.totalorder %s1305_s23, 1 }
   0xa   : > { %s1768_s27 = scalar_select %p100_p1, %s1669_s20, %s102_s25  }
   0xb   : > { %p1770_p5 = por %p113_p2, %p112_p0  ;;  %p1774_p6 = por %p119_p4, %p118_p3 }
   0xc   : > { %p1308_p7 = scmp.ge.s32.totalorder %s1673_s21, 1  ;;  %p200_p8 = scmp.lt.s32.totalorder %s1673_s21, 3 }
   0xe   : > { %p201_p9 = pnand %p1308_p7, %p200_p8 }
   0xf   : > { %p243_p10 = scmp.lt.s32.totalorder (!%p201_p9), %s1753_s22, 1  ;;  %v1675_v0 = vmov (!%p201_p9), 0.0   ;;  %vm1676_vm0 = vmmov (!%p201_p9), 0   ;;  %s1677_s10 = smov (!%p201_p9), 96   ;;  %vm267_vm1 = vcmask (!%p201_p9), 64512   ;;  %vm317_vm2 = vcmask (!%p201_p9), 130048  }
  0x10   : > { %204 = sbr.rel (%p201_p9) target bundleno = 1609 (0x649), region = 28  ;;  %1388 = vmatprep.subr.bf16.mxu0 (!%p201_p9), %v1675_v0  ;;  %1390 = vmatprep.mubr.msk.bf16.mxu0 (!%p201_p9), %vm1676_vm0, %v1675_v0  ;;  %s1678_s11 = smov (!%p201_p9), 64   ;;  %vm426_vm3 = vcmask (!%p201_p9), 7168  }
  0x11   : > { %1394 = vmatprep.subr.bf16.mxu1 (!%p201_p9), %v1675_v0  ;;  %1396 = vmatprep.mubr.msk.bf16.mxu1 (!%p201_p9), %vm1676_vm0, %v1675_v0  ;;  %s1679_s12 = smov (!%p201_p9), 80   ;;  %s1680_s13 = smov (!%p201_p9), 88  }
  0x12   : > { %s1681_s14 = smov (!%p201_p9), 120   ;;  %s1682_s15 = smov (!%p201_p9), 112  }
  0x13   : > { %s1683_s16 = smov (!%p201_p9), 72   ;;  %s1684_s17 = smov (!%p201_p9), 104  }
  0x14   : > { %s1824_s23 = sand.u32 (!%p201_p9), 1, %s1665_s19  }
  0x15   : > { %s1309_s25 = sshll.u32 (!%p201_p9), %s1824_s23, 6 }
  0x16   : > { %s1829_s26 = scalar_lea.vmem (!%p201_p9), [#allocation2], %s1309_s25 }
  0x17   : > { %s1785_s30 = scalar_select %p243_p10, %s1753_s22, 1 }
  0x19   : > { %s1367_s6 = sshll.u32 %s1785_s30, 4 }
  0x1a   : > { %s247_s9 = scalar_lea.vmem %s2083_s0, %s1367_s6 }
  0x1b   : > { %v1796_v1 = vld [vmem:[%s247_s9] sm:$0xff]  ;;  %v1798_v2 = vld [vmem:[%s247_s9 + $0x8] sm:$0xff]  ;;  %s1855_s9 = scalar_lea.vmem %s2085_s2, %s1367_s6  ;;  %s1685_s6 = smov 56  }
  0x1c   : > { %v1802_v3 = vpack.c.bf16 %v1798_v2, %v1796_v1 }
  0x1e   : > { %265 = vrot.lane.b32.xlu0 %v1802_v3, %s1677_s10  ;;  %s1686_s10 = smov 40  }
  0x90   : > { %v266_v4 = vpop.permute.xlu0 %265 }
  0x91   : > { %v272_v5 = vsel %vm267_vm1, %v266_v4, 0 }
  0x92   : > { %1389 = vmatpush3.bf16.xpose.msra.mxu0 %v272_v5 }
  0x93   : > { %1406 = vmatprep.subr.bf16.mxu0 %v1675_v0 }
  0x99   : > { %1391 = vmatmul.mubr.msk.bf16.vlgmr.msra.gmra.mrb[0].mxu0 %vm267_vm1, %v1802_v3 }
  0x9a   : > { %1408 = vmatprep.mubr.msk.bf16.mxu0 %vm1676_vm0, %v1675_v0 }
 0x16c   : > { %v308_v6 = vpop.f32.mrb[0].mxu0 }
 0x16d   : > { %v315_v7 = vmul.f32 0.35355338, %v308_v6  ;;  %v1392_v8 = vpop.f32.mrb[1].mxu0 }
 0x16e   : > { %v311_v9 = vpop.f32.mrb[2].mxu0 }
 0x16f   : > { %v316_v10 = vmul.f32 0.35355338, %v311_v9  ;;  %v1393_v11 = vpop.f32.mrb[3].mxu0  ;;  %v318_v12 = vsel %vm317_vm2, %v315_v7, -inf }
 0x170   : > { %319 = vmax.xlane.f32.xlu0 %v318_v12 }
 0x171   : > { %v321_v13 = vsel %vm317_vm2, %v316_v10, -inf }
 0x172   : > { %322 = vmax.xlane.f32.xlu1 %v321_v13 }
 0x183   : > { %343 = vrot.lane.b32.xlu1 %v1802_v3, %s1678_s11  ;;  %s1687_s11 = smov 48  }
 0x186   : > { %686 = vrot.lane.b32.xlu0 %v1802_v3, %s1679_s12  ;;  %s1689_s12 = smov 32  }
 0x1fd   : > { %v320_v14 = vpop.xlane.xlu0 %319 }
 0x1fe   : > { %v324_v15 = vsub.f32 %v315_v7, %v320_v14 }
 0x1ff   : > { %v323_v16 = vpop.xlane.xlu1 %322 }
 0x200   : > { %v326_v17 = vmul.f32 1.442695, %v324_v15  ;;  %v325_v18 = vsub.f32 %v316_v10, %v323_v16 }
 0x201   : > { %v687_v35 = vpop.permute.xlu0 %686 }
 0x202   : > { %1515 = vpow2.f32 %v326_v17  ;;  %v328_v19 = vmul.f32 1.442695, %v325_v18  ;;  %v692_v37 = vsel %vm267_vm1, %v687_v35, 0 }
 0x203   : > { %v344_v20 = vpop.permute.xlu1 %343 }
 0x204   : > { %1517 = vpow2.f32 %v328_v19  ;;  %1395 = vmatpush3.bf16.msra.mxu1 %v344_v20 }
 0x205   : > { %1400 = vmatprep.subr.bf16.mxu1 %v1675_v0 }
 0x20c   : > { %v1516_v21 = vpop.eup %1515 }
 0x20d   : > { %v330_v22 = vsel %vm317_vm2, %v1516_v21, 0.0 }
 0x20e   : > { %v1518_v23 = vpop.eup %1517  ;;  %331 = vadd.xlane.f32.xlu1 %v330_v22 }
 0x20f   : > { %v333_v24 = vsel %vm317_vm2, %v1518_v23, 0.0 }
 0x212   : > { %334 = vadd.xlane.f32.xlu1 %v333_v24 }
 0x223   : > { %471 = vrot.lane.b32.xlu1 %v1802_v3, %s1680_s13  ;;  %s1690_s13 = smov 31  }
 0x227   : > { %469 = vrot.lane.b32.xlu1 %v1802_v3, %s1681_s14  ;;  %s1692_s14 = smov 30  }
 0x22b   : > { %684 = vrot.lane.b32.xlu1 %v1802_v3, %s1682_s15  ;;  %s1369_s15 = sshll.u32 %s1785_s30, 6  ;;  %s1116_s30 = scalar_lea.sflag [#allocation3], %s1824_s23 }
 0x22c   : > { %s1939_s7 = scalar_lea.vmem %s2088_s5, %s1369_s15  ;;  %s1697_s15 = smov [#allocation2]  }
 0x22f   : > { %901 = vrot.lane.b32.xlu1 %v1802_v3, %s1683_s16  ;;  %s1583_s16 = sshll.u32 %s1697_s15, 4  ;;  %s1584_s16 = int_to_ptr.vmem [resolvable:$false] %s1583_s16 }
 0x233   : > { %899 = vrot.lane.b32.xlu1 %v1802_v3, %s1684_s17 }
 0x29b   : > { %v332_v25 = vpop.xlane.xlu1 %331 }
 0x29c   : > { %1519 = vrcp.f32 %v332_v25 }
 0x29f   : > { %v335_v26 = vpop.xlane.xlu1 %334 }
 0x2a0   : > { %1521 = vrcp.f32 %v335_v26 }
 0x2a3   : > { %v472_v30 = vpop.permute.xlu1 %471 }
 0x2a4   : > { %v477_v32 = vsel %vm267_vm1, %v472_v30, 0 }
 0x2a6   : > { %v1520_v27 = vpop.eup %1519 }
 0x2a7   : > { %v338_v28 = vmul.f32 %v1520_v27, %v1516_v21  ;;  %v470_v34 = vpop.permute.xlu1 %469 }
 0x2a9   : > { %340 = vst.msk [vmem:[%s1829_s26] sm:$0xff] %vm317_vm2, %v338_v28 }
 0x2aa   : > { %v1522_v29 = vpop.eup %1521 }
 0x2ab   : > { %v339_v31 = vmul.f32 %v1522_v29, %v1518_v23  ;;  %v685_v36 = vpop.permute.xlu1 %684 }
 0x2ad   : > { %341 = vst.msk [vmem:[%s1829_s26 + $0x8] sm:$0xff] %vm317_vm2, %v339_v31  ;;  %v342_v33 = vpack.c.bf16 %v339_v31, %v338_v28 }
 0x2af   : > { %1397 = vmatmul.mubr.msk.bf16.vlgmr.msra.gmra.mrb[0].mxu1 %vm317_vm2, %v342_v33  ;;  %v902_v38 = vpop.permute.xlu1 %901 }
 0x2b0   : > { %1401 = vmatpush3.bf16.xpose.msra.mxu1 %v477_v32  ;;  %1402 = vmatprep.mubr.msk.bf16.mxu1 %vm1676_vm0, %v1675_v0  ;;  %v907_v39 = vsel %vm267_vm1, %v902_v38, 0 }
 0x2b1   : > { %1412 = vmatprep.subr.bf16.mxu1 %v1675_v0 }
 0x2b3   : > { %v900_v40 = vpop.permute.xlu1 %899 }
 0x2b7   : > { %1403 = vmatmul.mubr.msk.bf16.vlgmr.msra.gmra.mrb[4].mxu1 %vm267_vm1, %v470_v34 }
 0x2b8   : > { %1413 = vmatpush3.bf16.xpose.msra.mxu1 %v692_v37  ;;  %1414 = vmatprep.mubr.msk.bf16.mxu1 %vm1676_vm0, %v1675_v0 }
 0x2b9   : > { %1424 = vmatprep.subr.bf16.mxu1 %v1675_v0 }
 0x2bf   : > { %1415 = vmatmul.mubr.msk.bf16.vlgmr.msra.gmra.mrb[8].mxu1 %vm267_vm1, %v685_v36 }
 0x2c0   : > { %1425 = vmatpush3.bf16.xpose.msra.mxu1 %v907_v39  ;;  %1426 = vmatprep.mubr.msk.bf16.mxu1 %vm1676_vm0, %v1675_v0 }
 0x2c7   : > { %1427 = vmatmul.mubr.msk.bf16.vlgmr.msra.gmra.mrb[12].mxu1 %vm267_vm1, %v900_v40  ;;  %v1320_v40 = vmul.f32 -5.0, %v1798_v2 }
 0x382   : > { %v383_v41 = vpop.f32.mrb[0].mxu1 }
 0x383   : > { %390 = vst.msk [vmem:[%s1855_s9] sm:$0xff] %vm267_vm1, %v383_v41  ;;  %v1398_v42 = vpop.f32.mrb[1].mxu1  ;;  %v1319_v41 = vmul.f32 -5.0, %v1796_v1 }
 0x384   : > { %v386_v43 = vpop.f32.mrb[2].mxu1  ;;  %v1688_v42 = vmov 96  }
 0x385   : > { %391 = vst.msk [vmem:[%s1855_s9 + $0x8] sm:$0xff] %vm267_vm1, %v386_v43  ;;  %v1399_v44 = vpop.f32.mrb[3].mxu1  ;;  %1506 = vset.pattern.permute.xlu0 %v1688_v42  ;;  %1505 = vset.pattern.permute.xlu1 %v1688_v42  ;;  %v400_v43 = vmul.f32 1.442695, %v1320_v40 }
 0x386   : > { %v398_v44 = vmul.f32 1.442695, %v1319_v41 }
 0x38a   : > { %v513_v45 = vpop.f32.mrb[4].mxu1 }
 0x38b   : > { %v520_v46 = vmul.f32 0.35355338, %v513_v45  ;;  %v1404_v47 = vpop.f32.mrb[5].mxu1 }
 0x38c   : > { %v516_v48 = vpop.f32.mrb[6].mxu1 }
 0x38d   : > { %v521_v49 = vmul.f32 0.35355338, %v516_v48  ;;  %v1405_v50 = vpop.f32.mrb[7].mxu1  ;;  %v522_v51 = vsel %vm317_vm2, %v520_v46, -inf }
 0x38e   : > { %523 = vmax.xlane.f32.xlu1 %v522_v51 }
 0x38f   : > { %v525_v52 = vsel %vm317_vm2, %v521_v49, -inf }
 0x390   : > { %526 = vmax.xlane.f32.xlu0 %v525_v52 }
 0x392   : > { %v728_v53 = vpop.f32.mrb[8].mxu1 }
 0x393   : > { %v735_v54 = vmul.f32 0.35355338, %v728_v53  ;;  %v1416_v55 = vpop.f32.mrb[9].mxu1 }
 0x394   : > { %v731_v56 = vpop.f32.mrb[10].mxu1 }
 0x395   : > { %v736_v57 = vmul.f32 0.35355338, %v731_v56  ;;  %v1417_v58 = vpop.f32.mrb[11].mxu1  ;;  %v737_v59 = vsel %vm317_vm2, %v735_v54, -inf }
 0x396   : > { %738 = vmax.xlane.f32.xlu1 %v737_v59 }
 0x397   : > { %v740_v60 = vsel %vm317_vm2, %v736_v57, -inf }
 0x398   : > { %741 = vmax.xlane.f32.xlu0 %v740_v60 }
 0x39a   : > { %v943_v61 = vpop.f32.mrb[12].mxu1 }
 0x39b   : > { %v950_v62 = vmul.f32 0.35355338, %v943_v61  ;;  %v1428_v63 = vpop.f32.mrb[13].mxu1 }
 0x39c   : > { %v946_v4 = vpop.f32.mrb[14].mxu1 }
 0x39d   : > { %v951_v5 = vmul.f32 0.35355338, %v946_v4  ;;  %v1429_v6 = vpop.f32.mrb[15].mxu1  ;;  %v952_v7 = vsel %vm317_vm2, %v950_v62, -inf  ;;  %v1691_v4 = vmov 97  }
 0x39e   : > { %953 = vmax.xlane.f32.xlu1 %v952_v7  ;;  %v1694_v6 = vmov 99  }
 0x39f   : > { %v955_v8 = vsel %vm317_vm2, %v951_v5, -inf }
 0x3a0   : > { %956 = vmax.xlane.f32.xlu0 %v955_v8 }
 0x3af   : > { %548 = vrot.lane.b32.xlu1 %v1802_v3, %s1685_s6 }
 0x41b   : > { %v524_v9 = vpop.xlane.xlu1 %523 }
 0x41c   : > { %v528_v10 = vsub.f32 %v520_v46, %v524_v9 }
 0x41d   : > { %v527_v11 = vpop.xlane.xlu0 %526 }
 0x41e   : > { %v530_v12 = vmul.f32 1.442695, %v528_v10  ;;  %v529_v13 = vsub.f32 %v521_v49, %v527_v11 }
 0x420   : > { %1523 = vpow2.f32 %v530_v12  ;;  %v532_v14 = vmul.f32 1.442695, %v529_v13 }
 0x422   : > { %1525 = vpow2.f32 %v532_v14 }
 0x423   : > { %v739_v15 = vpop.xlane.xlu1 %738 }
 0x424   : > { %v743_v16 = vsub.f32 %v735_v54, %v739_v15 }
 0x425   : > { %v742_v17 = vpop.xlane.xlu0 %741 }
 0x426   : > { %v745_v18 = vmul.f32 1.442695, %v743_v16  ;;  %v744_v19 = vsub.f32 %v736_v57, %v742_v17 }
 0x428   : > { %1527 = vpow2.f32 %v745_v18  ;;  %v747_v20 = vmul.f32 1.442695, %v744_v19 }
 0x42a   : > { %v1868_v21 = vpop.eup %1523  ;;  %1529 = vpow2.f32 %v747_v20 }
 0x42b   : > { %v954_v22 = vpop.xlane.xlu1 %953  ;;  %v534_v23 = vsel %vm317_vm2, %v1868_v21, 0.0 }
 0x42c   : > { %v1872_v24 = vpop.eup %1525  ;;  %v958_v25 = vsub.f32 %v950_v62, %v954_v22  ;;  %535 = vadd.xlane.f32.xlu1 %v534_v23 }
 0x42d   : > { %v957_v26 = vpop.xlane.xlu0 %956  ;;  %v537_v27 = vsel %vm317_vm2, %v1872_v24, 0.0 }
 0x42e   : > { %v960_v28 = vmul.f32 1.442695, %v958_v25  ;;  %v959_v29 = vsub.f32 %v951_v5, %v957_v26  ;;  %538 = vadd.xlane.f32.xlu0 %v537_v27  ;;  %v1693_v5 = vmov 98  }
 0x42f   : > { %v549_v30 = vpop.permute.xlu1 %548 }
 0x430   : > { %1531 = vpow2.f32 %v960_v28  ;;  %v962_v31 = vmul.f32 1.442695, %v959_v29  ;;  %1407 = vmatpush3.bf16.msra.mxu0 %v549_v30 }
 0x431   : > { %1418 = vmatprep.subr.bf16.mxu0 %v1675_v0 }
 0x432   : > { %v1877_v32 = vpop.eup %1527  ;;  %1533 = vpow2.f32 %v962_v31 }
 0x433   : > { %v749_v33 = vsel %vm317_vm2, %v1877_v32, 0.0  ;;  %1535 = vpow2.f32 %v400_v43 }
 0x434   : > { %v1881_v34 = vpop.eup %1529  ;;  %750 = vadd.xlane.f32.xlu1 %v749_v33  ;;  %1537 = vpow2.f32 %v398_v44 }
 0x435   : > { %v752_v35 = vsel %vm317_vm2, %v1881_v34, 0.0 }
 0x436   : > { %753 = vadd.xlane.f32.xlu0 %v752_v35 }
 0x43a   : > { %v1885_v36 = vpop.eup %1531 }
 0x43b   : > { %v964_v37 = vsel %vm317_vm2, %v1885_v36, 0.0 }
 0x43c   : > { %v1889_v38 = vpop.eup %1533  ;;  %965 = vadd.xlane.f32.xlu1 %v964_v37 }
 0x43d   : > { %v967_v39 = vsel %vm317_vm2, %v1889_v38, 0.0  ;;  %v1536_v45 = vpop.eup %1535 }
 0x43e   : > { %968 = vadd.xlane.f32.xlu0 %v967_v39  ;;  %v1538_v46 = vpop.eup %1537  ;;  %v403_v47 = vadd.f32 1.0, %v1536_v45 }
 0x43f   : > { %v402_v48 = vadd.f32 1.0, %v1538_v46 }
 0x440   : > { %1539 = vrcp.f32 %v403_v47 }
 0x441   : > { %1541 = vrcp.f32 %v402_v48 }
 0x44a   : > { %v1540_v49 = vpop.eup %1539 }
 0x44b   : > { %v1542_v50 = vpop.eup %1541 }
 0x44c   : > { %v408_v51 = vadd.f32 1e-05, %v1542_v50 }
 0x44d   : > { %978 = vrot.lane.b32.xlu1 %v1802_v3, %s1686_s10 }
 0x44e   : > { %v410_v52 = vmul.f32 1.0986123, %v408_v51 }
 0x450   : > { %v412_v53 = vmul.f32 1.442695, %v410_v52 }
 0x454   : > { %763 = vrot.lane.b32.xlu0 %v1802_v3, %s1687_s11  ;;  %v409_v3 = vadd.f32 1e-05, %v1540_v49  ;;  %s1959_s11 = scalar_lea.vmem [#allocation4], %s1309_s25  ;;  %s2089_s25 = smov 8  }
 0x456   : > { %v411_v2 = vmul.f32 1.0986123, %v409_v3 }
 0x458   : > { %v414_v1 = vmul.f32 1.442695, %v411_v2 }
 0x45a   : > { %1543 = vpow2.f32 %v414_v1 }
 0x45b   : > { %1545 = vpow2.f32 %v412_v53 }
 0x464   : > { %v1544_v54 = vpop.eup %1543 }
 0x465   : > { %v1546_v55 = vpop.eup %1545  ;;  %v1897_v56 = vadd.f32 -1.0, %v1544_v54 }
 0x466   : > { %v1899_v57 = vadd.f32 -1.0, %v1546_v55 }
 0x467   : > { %1547 = vrcp.f32 %v1897_v56  ;;  %422 = vrot.lane.b32.xlu0 %v1897_v56, %s1689_s12 }
 0x468   : > { %1549 = vrcp.f32 %v1899_v57  ;;  %420 = vrot.lane.b32.xlu1 %v1899_v57, %s1689_s12  ;;  %s1370_s12 = sshll.u32 %s1753_s22, 10 }
 0x469   : > { %s1986_s17 = scalar_lea.hbm %s2086_s3, %s1370_s12  ;;  %s1993_s22 = scalar_lea.hbm %s2087_s4, %s1370_s12 }
 0x471   : > { %v1548_v58 = vpop.eup %1547 }
 0x472   : > { %v1550_v59 = vpop.eup %1549  ;;  %v434_v60 = vmul.f32 %v1548_v58, %v1548_v58  ;;  %v432_v63 = vmul.f32 0.3989423, %v1548_v58 }
 0x473   : > { %v433_v61 = vmul.f32 %v1550_v59, %v1550_v59  ;;  %v431_v62 = vmul.f32 0.3989423, %v1550_v59 }
 0x474   : > { %442 = vperm.xlu0 %1506, %v434_v60  }
 0x475   : > { %437 = vperm.xlu1 %1505, %v433_v61  }
 0x478   : > { %634 = vrot.lane.b32.xlu0 %v1899_v57, %s1690_s13 }
 0x479   : > { %453 = vperm.xlu1 %1505, %v431_v62   ;;  %1507 = vset.pattern.permute.xlu0 %v1691_v4 }
 0x47c   : > { %651 = vperm.xlu0 %1507, %v433_v61  }
 0x47d   : > { %458 = vperm.xlu1 %1505, %v432_v63  }
 0x480   : > { %672 = vperm.xlu0 %1507, %v432_v63  }
 0x481   : > { %636 = vrot.lane.b32.xlu1 %v1897_v56, %s1690_s13  ;;  %s1142_s13 = sshll.u32 %s1829_s26, 4  ;;  %s1988_s13 = int_to_ptr.vmem [resolvable:$true] %s1142_s13 }
 0x482   : > { %1508 = vset.pattern.permute.xlu1 %v1691_v4  ;;  %s1579_s10 = scalar_lea.vmem %s1988_s13, 1024  ;;  %p1586_p0 = scmp.lt.s32.totalorder %s1988_s13, %s1584_s16 }
 0x483   : > { %p1580_p11 = scmp.ne.s32.totalorder %s1988_s13, %s1579_s10 }
 0x484   : > { %851 = vrot.lane.b32.xlu0 %v1897_v56, %s1692_s14 }
 0x485   : > { %656 = vperm.xlu1 %1508, %v434_v60   ;;  %1510 = vset.pattern.permute.xlu0 %v1693_v5  ;;  %p1581_p12 = pnand %p1580_p11, %p1770_p5 }
 0x487   : > { %p1582_p13 = pneg %p1581_p12 }
 0x488   : > { %871 = vperm.xlu0 %1510, %v434_v60  }
 0x489   : > { %667 = vperm.xlu1 %1508, %v431_v62  }
 0x48c   : > { %882 = vperm.xlu0 %1510, %v431_v62  }
 0x48d   : > { %849 = vrot.lane.b32.xlu1 %v1899_v57, %s1692_s14  ;;  %s1696_s14 = smov 16  }
 0x48e   : > { %1509 = vset.pattern.permute.xlu1 %v1693_v5 }
 0x490   : > { %1513 = vset.pattern.permute.xlu0 %v1694_v6 }
 0x491   : > { %866 = vperm.xlu1 %1509, %v433_v61   ;;  %1097 = vperm.xlu0 %1513, %v431_v62  }
 0x495   : > { %1511 = vset.pattern.permute.xlu1 %v1694_v6 }
 0x496   : > { %1081 = vperm.xlu1 %1511, %v433_v61  }
 0x49a   : > { %1086 = vperm.xlu1 %1511, %v434_v60  }
 0x49e   : > { %1512 = vset.pattern.permute.xlu1 %v1693_v5 }
 0x49f   : > { %887 = vperm.xlu1 %1512, %v432_v63  }
 0x4a3   : > { %1514 = vset.pattern.permute.xlu1 %v1694_v6 }
 0x4a4   : > { %1102 = vperm.xlu1 %1514, %v432_v63  }
 0x4b9   : > { %v536_v7 = vpop.xlane.xlu1 %535 }
 0x4ba   : > { %1551 = vrcp.f32 %v536_v7 }
 0x4bb   : > { %v539_v8 = vpop.xlane.xlu0 %538 }
 0x4bc   : > { %1553 = vrcp.f32 %v539_v8 }
 0x4c1   : > { %v751_v9 = vpop.xlane.xlu1 %750 }
 0x4c2   : > { %1555 = vrcp.f32 %v751_v9 }
 0x4c3   : > { %v754_v10 = vpop.xlane.xlu0 %753 }
 0x4c4   : > { %v1552_v11 = vpop.eup %1551  ;;  %1557 = vrcp.f32 %v754_v10 }
 0x4c5   : > { %v542_v12 = vmul.f32 %v1552_v11, %v1868_v21 }
 0x4c6   : > { %v1554_v13 = vpop.eup %1553 }
 0x4c7   : > { %1324 = vst.msk [vmem:[%s1829_s26 + $0x10] sm:$0xff] %vm317_vm2, %v542_v12  ;;  %v543_v14 = vmul.f32 %v1554_v13, %v1872_v24 }
 0x4c9   : > { %1325 = vst.msk [vmem:[%s1829_s26 + $0x18] sm:$0xff] %vm317_vm2, %v543_v14  ;;  %v966_v15 = vpop.xlane.xlu1 %965  ;;  %v547_v16 = vpack.c.bf16 %v543_v14, %v542_v12 }
 0x4ca   : > { %1559 = vrcp.f32 %v966_v15 }
 0x4cb   : > { %v969_v17 = vpop.xlane.xlu0 %968  ;;  %1409 = vmatmul.mubr.msk.bf16.vlgmr.msra.gmra.mrb[4].mxu0 %vm317_vm2, %v547_v16 }
 0x4cc   : > { %v1556_v18 = vpop.eup %1555  ;;  %1561 = vrcp.f32 %v969_v17  ;;  %1420 = vmatprep.mubr.msk.bf16.mxu0 %vm1676_vm0, %v1675_v0 }
 0x4cd   : > { %v757_v19 = vmul.f32 %v1556_v18, %v1877_v32  ;;  %v979_v24 = vpop.permute.xlu1 %978  ;;  %v259_v32 = vld [vmem:[%s2084_s1] sm:$0xff] }
 0x4ce   : > { %v1558_v20 = vpop.eup %1557 }
 0x4cf   : > { %1336 = vst.msk [vmem:[%s1829_s26 + $0x20] sm:$0xff] %vm317_vm2, %v757_v19  ;;  %v758_v21 = vmul.f32 %v1558_v20, %v1881_v34  ;;  %v764_v22 = vpop.permute.xlu0 %763 }
 0x4d0   : > { %1419 = vmatpush3.bf16.msra.mxu0 %v764_v22 }
 0x4d1   : > { %1337 = vst.msk [vmem:[%s1829_s26 + $0x28] sm:$0xff] %vm317_vm2, %v758_v21  ;;  %v762_v23 = vpack.c.bf16 %v758_v21, %v757_v19  ;;  %1430 = vmatprep.subr.bf16.mxu0 %v1675_v0 }
 0x4d3   : > { %1421 = vmatmul.mubr.msk.bf16.vlgmr.msra.gmra.mrb[8].mxu0 %vm317_vm2, %v762_v23 }
 0x4d4   : > { %v1560_v25 = vpop.eup %1559  ;;  %1431 = vmatpush3.bf16.msra.mxu0 %v979_v24  ;;  %1432 = vmatprep.mubr.msk.bf16.mxu0 %vm1676_vm0, %v1675_v0  ;;  %v260_v0 = vld [vmem:[%s2084_s1 + $0x8] sm:$0xff] }
 0x4d5   : > { %v972_v26 = vmul.f32 %v1560_v25, %v1885_v36 }
 0x4d6   : > { %v1562_v27 = vpop.eup %1561 }
 0x4d7   : > { %1348 = vst.msk [vmem:[%s1829_s26 + $0x30] sm:$0xff] %vm317_vm2, %v972_v26  ;;  %v973_v28 = vmul.f32 %v1562_v27, %v1889_v38 }
 0x4d9   : > { %1349 = vst.msk [vmem:[%s1829_s26 + $0x38] sm:$0xff] %vm317_vm2, %v973_v28  ;;  %v977_v29 = vpack.c.bf16 %v973_v28, %v972_v26  ;;  %v423_v30 = vpop.permute.xlu0 %422  ;;  %s1158_s26 = sshll.u32 %s1959_s11, 4  ;;  %s2025_s26 = int_to_ptr.vmem [resolvable:$true] %s1158_s26 }
 0x4da   : > { %v421_v31 = vpop.permute.xlu1 %420  ;;  %428 = vst.msk [vmem:[%s1939_s7 + $0x8] sm:$0xff] %vm426_vm3, %v423_v30 }
 0x4db   : > { %1433 = vmatmul.mubr.msk.bf16.vlgmr.msra.gmra.mrb[12].mxu0 %vm317_vm2, %v977_v29  ;;  %427 = vst.msk [vmem:[%s1939_s7] sm:$0xff] %vm426_vm3, %v421_v31 }
 0x4f3   : > { %v443_v33 = vpop.permute.xlu0 %442 }
 0x4f4   : > { %v438_v34 = vpop.permute.xlu1 %437  ;;  %v446_v35 = vmul.f32 %v443_v33, %v260_v0 }
 0x4f5   : > { %v445_v36 = vmul.f32 %v438_v34, %v259_v32 }
 0x4f6   : > { %v449_v37 = vmul.f32 1.442695, %v446_v35 }
 0x4f7   : > { %v447_v38 = vmul.f32 1.442695, %v445_v36  ;;  %v635_v40 = vpop.permute.xlu0 %634 }
 0x4f8   : > { %v454_v39 = vpop.permute.xlu1 %453  ;;  %1563 = vpow2.f32 %v449_v37  ;;  %1331 = vst.msk [vmem:[%s1939_s7 + $0x10] sm:$0xff] %vm426_vm3, %v635_v40 }
 0x4f9   : > { %1565 = vpow2.f32 %v447_v38 }
 0x4fb   : > { %v652_v42 = vpop.permute.xlu0 %651 }
 0x4fc   : > { %v459_v41 = vpop.permute.xlu1 %458  ;;  %v659_v43 = vmul.f32 %v652_v42, %v259_v32 }
 0x4fe   : > { %v661_v44 = vmul.f32 1.442695, %v659_v43 }
 0x4ff   : > { %v673_v46 = vpop.permute.xlu0 %672 }
 0x500   : > { %v637_v45 = vpop.permute.xlu1 %636  ;;  %1567 = vpow2.f32 %v661_v44 }
 0x501   : > { %1332 = vst.msk [vmem:[%s1939_s7 + $0x18] sm:$0xff] %vm426_vm3, %v637_v45 }
 0x502   : > { %v1564_v47 = vpop.eup %1563 }
 0x503   : > { %v1566_v48 = vpop.eup %1565  ;;  %v462_v49 = vmul.f32 %v1564_v47, %v459_v41  ;;  %v852_v3 = vpop.permute.xlu0 %851 }
 0x504   : > { %v657_v50 = vpop.permute.xlu1 %656  ;;  %v461_v51 = vmul.f32 %v1566_v48, %v454_v39  ;;  %1344 = vst.msk [vmem:[%s1939_s7 + $0x28] sm:$0xff] %vm426_vm3, %v852_v3 }
 0x505   : > { %v660_v2 = vmul.f32 %v657_v50, %v260_v0  ;;  %464 = vst.msk [vmem:[%s1959_s11 + $0x8] sm:$0xff] %vm317_vm2, %v462_v49 }
 0x506   : > { %463 = vst.msk [vmem:[%s1959_s11] sm:$0xff] %vm317_vm2, %v461_v51 }
 0x507   : > { %v663_v52 = vmul.f32 1.442695, %v660_v2  ;;  %v872_v53 = vpop.permute.xlu0 %871 }
 0x508   : > { %v668_v1 = vpop.permute.xlu1 %667  ;;  %v875_v54 = vmul.f32 %v872_v53, %v260_v0 }
 0x509   : > { %1569 = vpow2.f32 %v663_v52 }
 0x50a   : > { %v1568_v55 = vpop.eup %1567  ;;  %v878_v60 = vmul.f32 1.442695, %v875_v54 }
 0x50b   : > { %v675_v58 = vmul.f32 %v1568_v55, %v668_v1  ;;  %v883_v14 = vpop.permute.xlu0 %882 }
 0x50c   : > { %v850_v59 = vpop.permute.xlu1 %849  ;;  %1571 = vpow2.f32 %v878_v60 }
 0x50d   : > { %1343 = vst.msk [vmem:[%s1939_s7 + $0x20] sm:$0xff] %vm426_vm3, %v850_v59 }
 0x50e   : > { %1333 = vst.msk [vmem:[%s1959_s11 + $0x10] sm:$0xff] %vm317_vm2, %v675_v58 }
 0x510   : > { %v867_v61 = vpop.permute.xlu1 %866  ;;  %v1098_v19 = vpop.permute.xlu0 %1097 }
 0x511   : > { %v874_v62 = vmul.f32 %v867_v61, %v259_v32 }
 0x513   : > { %v1570_v63 = vpop.eup %1569  ;;  %v876_v4 = vmul.f32 1.442695, %v874_v62 }
 0x514   : > { %v676_v5 = vmul.f32 %v1570_v63, %v673_v46 }
 0x515   : > { %v1082_v6 = vpop.permute.xlu1 %1081  ;;  %1573 = vpow2.f32 %v876_v4 }
 0x516   : > { %v1089_v7 = vmul.f32 %v1082_v6, %v259_v32  ;;  %1334 = vst.msk [vmem:[%s1959_s11 + $0x18] sm:$0xff] %vm317_vm2, %v676_v5  ;;  %v1572_v11 = vpop.eup %1571 }
 0x518   : > { %v1091_v8 = vmul.f32 1.442695, %v1089_v7 }
 0x519   : > { %v1087_v9 = vpop.permute.xlu1 %1086 }
 0x51a   : > { %1575 = vpow2.f32 %v1091_v8  ;;  %v1090_v10 = vmul.f32 %v1087_v9, %v260_v0 }
 0x51c   : > { %v1093_v12 = vmul.f32 1.442695, %v1090_v10 }
 0x51e   : > { %v888_v13 = vpop.permute.xlu1 %887  ;;  %1577 = vpow2.f32 %v1093_v12 }
 0x51f   : > { %v891_v15 = vmul.f32 %v1572_v11, %v888_v13  ;;  %v1574_v16 = vpop.eup %1573 }
 0x520   : > { %v890_v17 = vmul.f32 %v1574_v16, %v883_v14 }
 0x521   : > { %1346 = vst.msk [vmem:[%s1959_s11 + $0x28] sm:$0xff] %vm317_vm2, %v891_v15 }
 0x522   : > { %1345 = vst.msk [vmem:[%s1959_s11 + $0x20] sm:$0xff] %vm317_vm2, %v890_v17 }
 0x523   : > { %v1103_v22 = vpop.permute.xlu1 %1102 }
 0x524   : > { %v1576_v18 = vpop.eup %1575 }
 0x525   : > { %v1105_v20 = vmul.f32 %v1576_v18, %v1098_v19 }
 0x527   : > { %1357 = vst.msk [vmem:[%s1959_s11 + $0x30] sm:$0xff] %vm317_vm2, %v1105_v20 }
 0x528   : > { %v1578_v21 = vpop.eup %1577 }
 0x529   : > { %v1106_v23 = vmul.f32 %v1578_v21, %v1103_v22 }
 0x52b   : > { %1358 = vst.msk [vmem:[%s1959_s11 + $0x38] sm:$0xff] %vm317_vm2, %v1106_v23 }
 0x59e   : > { %v588_v24 = vpop.f32.mrb[4].mxu0 }
 0x59f   : > { %597 = vrot.lane.b32.xlu0 %v588_v24, %s2089_s25  ;;  %v1410_v25 = vpop.f32.mrb[5].mxu0 }
 0x5a0   : > { %v591_v26 = vpop.f32.mrb[6].mxu0 }
 0x5a1   : > { %599 = vrot.lane.b32.xlu1 %v591_v26, %s2089_s25  ;;  %v1411_v27 = vpop.f32.mrb[7].mxu0  ;;  %s1585_s25 = scalar_lea.vmem %s1584_s16, 2048 }
 0x5a2   : > { %p1587_p1 = scmp.lt.s32.totalorder %s1585_s25, %s1579_s10 }
 0x5a4   : > { %p1588_p2 = por %p1587_p1, %p1586_p0 }
 0x5a6   : > { %v803_v28 = vpop.f32.mrb[8].mxu0  ;;  %p1589_p3 = pnand %p1588_p2, %p1582_p13 }
 0x5a7   : > { %812 = vrot.lane.b32.xlu1 %v803_v28, %s1696_s14  ;;  %v1422_v29 = vpop.f32.mrb[9].mxu0 }
 0x5a8   : > { %v806_v30 = vpop.f32.mrb[10].mxu0 }
 0x5a9   : > { %814 = vrot.lane.b32.xlu0 %v806_v30, %s1696_s14  ;;  %v1423_v31 = vpop.f32.mrb[11].mxu0 }
 0x5aa   : > { %1592 = shalt.err (!%p1589_p3)
}
 0x5ab   : > { %s1593_s12 = scalar_lea.hbm %s1986_s17, 1024  ;;  %s1597_s6 = scalar_lea.hbm %s2086_s3, 2048 }
 0x5ac   : > { %p1594_p4 = scmp.ne.s32.totalorder %s1986_s17, %s1593_s12  ;;  %p1598_p9 = scmp.lt.u32.totalorder %s1986_s17, %s2086_s3 }
 0x5ad   : > { %p1599_p10 = scmp.lt.u32.totalorder %s1597_s6, %s1593_s12  ;;  %p1601_p12 = scmp.lt.u32.totalorder %s1593_s12, %s1986_s17 }
 0x5ae   : > { %p1595_p7 = pnand %p1594_p4, %p1770_p5 }
 0x5af   : > { %p1600_p11 = por %p1599_p10, %p1598_p9 }
 0x5b0   : > { %p1596_p8 = pneg %p1595_p7 }
 0x5b1   : > { %p1602_p13 = por %p1601_p12, %p1600_p11 }
 0x5b3   : > { %p1603_p0 = pnand %p1602_p13, %p1596_p8 }
 0x5b5   : > { %1606 = shalt.err (!%p1603_p0)
}
 0x5b6   : > { %s1698_s25 = smov 128   ;;  %s2093_s10 = smov 8  }
 0x5b7   : > { %1436 = dma.vmem_to_hbm [thread:$0]  (%p1770_p5), %s1988_s13, 1024, %s1986_s17, %s1116_s30, %s1698_s25, %s1698_s25, %s2093_s10  }
 0x5b8   : > { %s1121_s12 = scalar_lea.sflag [#allocation5], %s1824_s23  ;;  %s1607_s14 = scalar_lea.vmem %s2025_s26, 1024 }
 0x5b9   : > { %p1608_p1 = scmp.ne.s32.totalorder %s2025_s26, %s1607_s14  ;;  %s1699_s8 = smov [#allocation4]  }
 0x5ba   : > { %s1611_s6 = sshll.u32 %s1699_s8, 4  ;;  %s1612_s6 = int_to_ptr.vmem [resolvable:$false] %s1611_s6 }
 0x5bb   : > { %p1609_p2 = pnand %p1608_p1, %p1770_p5  ;;  %s1613_s15 = scalar_lea.vmem %s1612_s6, 2048 }
 0x5bc   : > { %p1614_p4 = scmp.lt.s32.totalorder %s2025_s26, %s1612_s6  ;;  %p1615_p7 = scmp.lt.s32.totalorder %s1613_s15, %s1607_s14 }
 0x5bd   : > { %p1610_p3 = pneg %p1609_p2 }
 0x5be   : > { %p1616_p8 = por %p1615_p7, %p1614_p4 }
 0x5c0   : > { %p1617_p9 = pnand %p1616_p8, %p1610_p3 }
 0x5c2   : > { %1620 = shalt.err (!%p1617_p9)
}
 0x5c3   : > { %s1621_s11 = scalar_lea.hbm %s1993_s22, 1024  ;;  %s1625_s30 = scalar_lea.hbm %s2087_s4, 2048 }
 0x5c4   : > { %p1622_p10 = scmp.ne.s32.totalorder %s1993_s22, %s1621_s11  ;;  %p1626_p13 = scmp.lt.u32.totalorder %s1993_s22, %s2087_s4 }
 0x5c5   : > { %p1627_p0 = scmp.lt.u32.totalorder %s1625_s30, %s1621_s11  ;;  %p1629_p2 = scmp.lt.u32.totalorder %s1621_s11, %s1993_s22 }
 0x5c6   : > { %p1623_p11 = pnand %p1622_p10, %p1770_p5 }
 0x5c7   : > { %p1628_p1 = por %p1627_p0, %p1626_p13 }
 0x5c8   : > { %p1624_p12 = pneg %p1623_p11 }
 0x5c9   : > { %p1630_p3 = por %p1629_p2, %p1628_p1 }
 0x5cb   : > { %p1631_p4 = pnand %p1630_p3, %p1624_p12 }
 0x5cd   : > { %1634 = shalt.err (!%p1631_p4)
}
 0x5ce   : > { %1437 = dma.vmem_to_hbm [thread:$0]  (%p1770_p5), %s2025_s26, 1024, %s1993_s22, %s1121_s12, %s1698_s25, %s1698_s25, %s2093_s10   ;;  %v1018_v0 = vpop.f32.mrb[12].mxu0  ;;  %vm603_vm4 = vcmask 130112   ;;  %vm818_vm5 = vcmask 195712   ;;  %vm1033_vm6 = vcmask 261312  }
 0x5cf   : > { %s1700_s14 = smov 24   ;;  %v1434_v32 = vpop.f32.mrb[13].mxu0  ;;  %s1701_s28 = smov 29  }
 0x5d0   : > { %1027 = vrot.lane.b32.xlu1 %v1018_v0, %s1700_s14  ;;  %v1021_v33 = vpop.f32.mrb[14].mxu0 }
 0x5d1   : > { %1029 = vrot.lane.b32.xlu0 %v1021_v33, %s1700_s14  ;;  %v1435_v34 = vpop.f32.mrb[15].mxu0 }
 0x5d4   : > { %1064 = vrot.lane.b32.xlu1 %v1899_v57, %s1701_s28 }
 0x5d5   : > { %1066 = vrot.lane.b32.xlu0 %v1897_v56, %s1701_s28 }
 0x611   : > { %v598_v35 = vpop.permute.xlu0 %597 }
 0x612   : > { %604 = vst.msk [vmem:[%s1855_s9] sm:$0xff] %vm603_vm4, %v598_v35 }
 0x613   : > { %v600_v36 = vpop.permute.xlu1 %599 }
 0x614   : > { %605 = vst.msk [vmem:[%s1855_s9 + $0x8] sm:$0xff] %vm603_vm4, %v600_v36 }
 0x619   : > { %v813_v37 = vpop.permute.xlu1 %812 }
 0x61a   : > { %819 = vst.msk [vmem:[%s1855_s9] sm:$0xff] %vm818_vm5, %v813_v37 }
 0x61b   : > { %v815_v38 = vpop.permute.xlu0 %814 }
 0x61c   : > { %820 = vst.msk [vmem:[%s1855_s9 + $0x8] sm:$0xff] %vm818_vm5, %v815_v38 }
 0x642   : > { %v1028_v39 = vpop.permute.xlu1 %1027 }
 0x643   : > { %1034 = vst.msk [vmem:[%s1855_s9] sm:$0xff] %vm1033_vm6, %v1028_v39  ;;  %v1030_v40 = vpop.permute.xlu0 %1029 }
 0x644   : > { %1035 = vst.msk [vmem:[%s1855_s9 + $0x8] sm:$0xff] %vm1033_vm6, %v1030_v40 }
 0x646   : > { %v1065_v57 = vpop.permute.xlu1 %1064 }
 0x647   : > { %1355 = vst.msk [vmem:[%s1939_s7 + $0x30] sm:$0xff] %vm426_vm3, %v1065_v57  ;;  %v1067_v56 = vpop.permute.xlu0 %1066 }
 0x648   : > { %1356 = vst.msk [vmem:[%s1939_s7 + $0x38] sm:$0xff] %vm426_vm3, %v1067_v56 }
 0x649 PF: > { %p1447_p5 = scmp.ge.s32.totalorder %s1673_s21, 2  ;;  %s1184_s23 = sand.u32 1, %s1661_s18  }
 0x64a   : > { %s1185_s22 = scalar_lea.sflag [#allocation3], %s1184_s23 }
 0x64b   : > { %p1441_p7 = pnand %p1447_p5, %p1774_p6 }
 0x64d   : > { %1652 = dma.done.wait (!%p1441_p7), %s1185_s22, 1024  }
 0x64e   : > { %1654 = vsyncadd (!%p1441_p7), %s1185_s22, 4294966272  ;;  %s1194_s26 = scalar_lea.sflag [#allocation5], %s1184_s23 }
 0x64f   : > { %1656 = dma.done.wait (!%p1441_p7), %s1194_s26, 1024  }
 0x650   : > { %1658 = vsyncadd (!%p1441_p7), %s1194_s26, 4294966272  ;;  %p19_p8 = scmp.ge.s32.totalorder %s1757_s24, 4   ;;  %s2094_s18 = smov %s1665_s19 }
 0x651   : > { %s2095_s19 = smov %s1669_s20  ;;  %s2096_s20 = smov %s1768_s27 }
 0x652   : > { %s2097_s21 = smov %s1757_s24  ;;  %21 = sbr.rel (!%p19_p8) target bundleno = 5 (0x5), region = 113 }
 0x659   :  { %1207 = vsyncpa [#allocation3], 1 }
 0x65a   :  { %1209 = vsyncpa [#allocation3 + $0x1], 1 }
 0x65b   :  { %1210 = vsyncpa [#allocation5], 1 }
 0x65c   :  { %1212 = vsyncpa [#allocation5 + $0x1], 1 }

// kernel: encoder_forward.8
= control target key start
LH: loop header
LB: loop body
LE: loop exit
PB: predicated region body
PF: predicated region fallthrough
CT: control target
= control target key end

     0   :  { %vm77_vm0 = vcmask 261120   ;;  %vm341_vm1 = vcmask 523264   ;;  %s750_s2 = inlined_call_operand.vmem [shape: bf16[32,32], index: 2, kind: input, shape index: {}]   ;;  %s751_s12 = inlined_call_operand.vmem [shape: f32[1,32], index: 12, kind: input, shape index: {}]   ;;  %s752_s13 = inlined_call_operand.vmem [shape: f32[1,32], index: 13, kind: input, shape index: {}]   ;;  %s753_s1 = inlined_call_operand.vmem [shape: f32[32,32], index: 1, kind: input, shape index: {}]   ;;  %s754_s3 = inlined_call_operand.vmem [shape: f32[1,32], index: 3, kind: input, shape index: {}]   ;;  %s755_s0 = inlined_call_operand.vmem [shape: f32[32,32], index: 0, kind: input, shape index: {}]   ;;  %s756_s4 = inlined_call_operand.vmem [shape: bf16[32,64], index: 4, kind: input, shape index: {}]   ;;  %s757_s6 = inlined_call_operand.vmem [shape: bf16[64,32], index: 6, kind: input, shape index: {}]   ;;  %s758_s8 = inlined_call_operand.vmem [shape: f32[1,32], index: 8, kind: input, shape index: {}]   ;;  %s759_s9 = inlined_call_operand.vmem [shape: f32[1,32], index: 9, kind: input, shape index: {}]   ;;  %s760_s5 = inlined_call_operand.vmem [shape: f32[1,64], index: 5, kind: input, shape index: {}]   ;;  %s761_s7 = inlined_call_operand.vmem [shape: f32[1,32], index: 7, kind: input, shape index: {}]   ;;  %s762_s10 = inlined_call_operand.vmem [shape: f32[1,32], index: 10, kind: input, shape index: {}]   ;;  %s763_s11 = inlined_call_operand.vmem [shape: f32[1,32], index: 11, kind: input, shape index: {}]   ;;  %s764_s14 = inlined_call_operand.vmem [shape: f32[32,32], index: 14, kind: output, shape index: {}]  }
   0x1   :  { %v546_v0 = vld [vmem:[%s750_s2] sm:$0xff]   ;;  %v547_v1 = vld [vmem:[%s750_s2 + $0x8] sm:$0xff]   ;;  %v50_v5 = vld [vmem:[%s753_s1 + $0x10] sm:$0xff] }
   0x2   :  { %518 = vmatprep.subr.bf16.mxu1 %v546_v0  ;;  %v48_v2 = vld [vmem:[%s753_s1] sm:$0xff]  ;;  %v49_v3 = vld [vmem:[%s753_s1 + $0x8] sm:$0xff]  ;;  %v51_v6 = vld [vmem:[%s753_s1 + $0x18] sm:$0xff] }
   0x3   :  { %519 = vmatpush3.bf16.msra.mxu1 %v546_v0  ;;  %v52_v4 = vpack.c.bf16 %v49_v3, %v48_v2  ;;  %v53_v7 = vpack.c.bf16 %v51_v6, %v50_v5  ;;  %v483_v8 = vld [vmem:[%s754_s3] ss:$0 sm:$0xff]  ;;  %v135_v10 = vld [vmem:[%s755_s0 + $0x10] sm:$0xff]  ;;  %v136_v16 = vld [vmem:[%s755_s0 + $0x18] sm:$0xff] }
   0x4   :  { %520 = vmatprep.subr.bf16.mxu1 %v547_v1  ;;  %v133_v13 = vld [vmem:[%s755_s0] sm:$0xff]  ;;  %v134_v20 = vld [vmem:[%s755_s0 + $0x8] sm:$0xff] }
   0x5   :  { %522 = vmatprep.mubr.msk.bf16.mxu1 %vm77_vm0, %v52_v4  ;;  %v548_v49 = vld [vmem:[%s756_s4] sm:$0xff]   ;;  %v549_v50 = vld [vmem:[%s756_s4 + $0x8] sm:$0xff]  }
   0x6   :  { %v550_v51 = vld [vmem:[%s757_s6] sm:$0xff]   ;;  %v551_v52 = vld [vmem:[%s757_s6 + $0x8] sm:$0xff]  }
   0x7   :  { %521 = vmatpush3.bf16.msra.mxu1 %v547_v1  ;;  %534 = vmatprep.subr.bf16.mxu0 %v550_v51  ;;  %v488_v3 = vld [vmem:[%s758_s8] ss:$0 sm:$0xff] }
   0x8   :  { %526 = vmatprep.subr.bf16.mxu1 %v548_v49  ;;  %535 = vmatpush3.bf16.msra.mxu0 %v550_v51 }
   0x9   :  { %536 = vmatprep.subr.bf16.mxu0 %v551_v52 }
   0xa   :  { %523 = vmatmul.mubr.msk.bf16.vlgmr.msra.gmra.mrb[0].mxu1 %vm77_vm0, %v53_v7 }
   0xb   :  { %527 = vmatpush3.bf16.msra.mxu1 %v548_v49 }
   0xc   :  { %528 = vmatprep.subr.bf16.mxu1 %v549_v50  ;;  %537 = vmatpush3.bf16.msra.mxu0 %v551_v52 }
   0xf   :  { %529 = vmatpush3.bf16.msra.mxu1 %v549_v50 }
  0xdd   :  { %v524_v9 = vpop.f32.mrb[0].mxu1 }
  0xde   :  { %v127_v11 = vadd.f32 %v524_v9, %v483_v8  ;;  %v118_v12 = vpop.f32.mrb[1].mxu1  ;;  %v489_v9 = vld [vmem:[%s759_s9] ss:$0 sm:$0xff] }
  0xdf   :  { %v119_v14 = vadd.f32 %v483_v8, %v118_v12  ;;  %v525_v15 = vpop.f32.mrb[2].mxu1 }
  0xe0   :  { %v130_v17 = vadd.f32 %v525_v15, %v483_v8  ;;  %v121_v18 = vpop.f32.mrb[3].mxu1  ;;  %v139_v19 = vadd.f32 %v135_v10, %v127_v11 }
  0xe1   :  { %v122_v21 = vadd.f32 %v483_v8, %v121_v18  ;;  %v137_v22 = vadd.f32 %v133_v13, %v119_v14 }
  0xe2   :  { %v149_v23 = vsel %vm77_vm0, %v139_v19, 0.0  ;;  %v140_v24 = vadd.f32 %v136_v16, %v130_v17 }
  0xe3   :  { %150 = vadd.xlane.f32.xlu1 %v149_v23  ;;  %v143_v25 = vsel %vm77_vm0, %v137_v22, 0.0  ;;  %v138_v26 = vadd.f32 %v134_v20, %v122_v21  ;;  %v552_v21 = vld [vmem:[%s757_s6 + $0x10] sm:$0xff]   ;;  %v490_v23 = vld [vmem:[%s760_s5] ss:$0 sm:$0xff] }
  0xe4   :  { %144 = vadd.xlane.f32.xlu0 %v143_v25  ;;  %v152_v27 = vsel %vm77_vm0, %v140_v24, 0.0  ;;  %538 = vmatprep.subr.bf16.mxu0 %v552_v21 }
  0xe5   :  { %v146_v28 = vsel %vm77_vm0, %v138_v26, 0.0  ;;  %539 = vmatpush3.bf16.msra.mxu0 %v552_v21 }
  0xe7   :  { %153 = vadd.xlane.f32.xlu1 %v152_v27 }
  0xe8   :  { %147 = vadd.xlane.f32.xlu0 %v146_v28 }
 0x170   :  { %v151_v29 = vpop.xlane.xlu1 %150 }
 0x171   :  { %v158_v30 = vmul.f32 0.03125, %v151_v29  ;;  %v145_v31 = vpop.xlane.xlu0 %144 }
 0x172   :  { %v156_v32 = vmul.f32 0.03125, %v145_v31 }
 0x173   :  { %v162_v33 = vsub.f32 %v139_v19, %v158_v30 }
 0x174   :  { %v160_v34 = vsub.f32 %v137_v22, %v156_v32  ;;  %v154_v35 = vpop.xlane.xlu1 %153  ;;  %v553_v22 = vld [vmem:[%s757_s6 + $0x18] sm:$0xff]  }
 0x175   :  { %v159_v36 = vmul.f32 0.03125, %v154_v35  ;;  %v148_v37 = vpop.xlane.xlu0 %147  ;;  %v166_v43 = vmul.f32 %v162_v33, %v162_v33  ;;  %540 = vmatprep.subr.bf16.mxu0 %v553_v22 }
 0x176   :  { %v157_v38 = vmul.f32 0.03125, %v148_v37  ;;  %v164_v39 = vmul.f32 %v160_v34, %v160_v34  ;;  %541 = vmatpush3.bf16.msra.mxu0 %v553_v22 }
 0x177   :  { %v163_v40 = vsub.f32 %v140_v24, %v159_v36  ;;  %v174_v45 = vsel %vm77_vm0, %v166_v43, 0.0 }
 0x178   :  { %v161_v41 = vsub.f32 %v138_v26, %v157_v38  ;;  %v168_v42 = vsel %vm77_vm0, %v164_v39, 0.0  ;;  %v495_v38 = vld [vmem:[%s761_s7] ss:$0 sm:$0xff] }
 0x179   :  { %169 = vadd.xlane.f32.xlu0 %v168_v42  ;;  %v167_v47 = vmul.f32 %v163_v40, %v163_v40 }
 0x17a   :  { %v165_v44 = vmul.f32 %v161_v41, %v161_v41 }
 0x17b   :  { %v177_v48 = vsel %vm77_vm0, %v167_v47, 0.0 }
 0x17c   :  { %v171_v46 = vsel %vm77_vm0, %v165_v44, 0.0 }
 0x17d   :  { %175 = vadd.xlane.f32.xlu0 %v174_v45  ;;  %172 = vadd.xlane.f32.xlu1 %v171_v46 }
 0x181   :  { %178 = vadd.xlane.f32.xlu1 %v177_v48 }
 0x206   :  { %v170_v53 = vpop.xlane.xlu0 %169 }
 0x207   :  { %v180_v54 = vmul.f32 0.03125, %v170_v53 }
 0x209   :  { %v184_v55 = vadd.f32 1e-05, %v180_v54 }
 0x20a   :  { %v173_v56 = vpop.xlane.xlu1 %172  ;;  %v176_v57 = vpop.xlane.xlu0 %175 }
 0x20b   :  { %554 = vrsqrt.f32 %v184_v55  ;;  %v181_v58 = vmul.f32 0.03125, %v173_v56  ;;  %v182_v59 = vmul.f32 0.03125, %v176_v57 }
 0x20d   :  { %v185_v60 = vadd.f32 1e-05, %v181_v58  ;;  %v186_v61 = vadd.f32 1e-05, %v182_v59 }
 0x20e   :  { %v179_v62 = vpop.xlane.xlu1 %178 }
 0x20f   :  { %556 = vrsqrt.f32 %v185_v60  ;;  %v183_v63 = vmul.f32 0.03125, %v179_v62 }
 0x210   :  { %558 = vrsqrt.f32 %v186_v61 }
 0x211   :  { %v187_v0 = vadd.f32 1e-05, %v183_v63 }
 0x213   :  { %560 = vrsqrt.f32 %v187_v0 }
 0x215   :  { %v555_v1 = vpop.eup %554 }
 0x216   :  { %v192_v2 = vmul.f32 %v555_v1, %v160_v34 }
 0x218   :  { %v202_v7 = vmul.f32 %v488_v3, %v192_v2 }
 0x219   :  { %v557_v4 = vpop.eup %556 }
 0x21a   :  { %v559_v5 = vpop.eup %558  ;;  %v193_v6 = vmul.f32 %v557_v4, %v161_v41  ;;  %v212_v14 = vadd.f32 %v489_v9, %v202_v7 }
 0x21b   :  { %v194_v8 = vmul.f32 %v559_v5, %v162_v33 }
 0x21c   :  { %v203_v10 = vmul.f32 %v488_v3, %v193_v6 }
 0x21d   :  { %v561_v11 = vpop.eup %560  ;;  %v204_v12 = vmul.f32 %v488_v3, %v194_v8 }
 0x21e   :  { %v195_v13 = vmul.f32 %v561_v11, %v163_v40  ;;  %v213_v15 = vadd.f32 %v489_v9, %v203_v10 }
 0x21f   :  { %v214_v18 = vadd.f32 %v489_v9, %v204_v12 }
 0x220   :  { %v205_v16 = vmul.f32 %v488_v3, %v195_v13  ;;  %v216_v17 = vpack.c.bf16 %v213_v15, %v212_v14 }
 0x222   :  { %530 = vmatprep.mubr.msk.bf16.mxu1 %vm77_vm0, %v216_v17  ;;  %v215_v19 = vadd.f32 %v489_v9, %v205_v16 }
 0x224   :  { %v217_v20 = vpack.c.bf16 %v215_v19, %v214_v18 }
 0x226   :  { %531 = vmatmul.mubr.msk.bf16.vlgmr.msra.gmra.mrb[4].mxu1 %vm77_vm0, %v217_v20 }
 0x2f9   :  { %v532_v24 = vpop.f32.mrb[4].mxu1 }
 0x2fa   :  { %v290_v25 = vadd.f32 %v532_v24, %v490_v23  ;;  %v281_v26 = vpop.f32.mrb[5].mxu1  ;;  %v502_v24 = vld [vmem:[%s762_s10] ss:$0 sm:$0xff] }
 0x2fb   :  { %v282_v27 = vadd.f32 %v490_v23, %v281_v26  ;;  %v533_v28 = vpop.f32.mrb[6].mxu1 }
 0x2fc   :  { %v293_v29 = vadd.f32 %v533_v28, %v490_v23  ;;  %v284_v30 = vpop.f32.mrb[7].mxu1  ;;  %v298_v32 = vmax.f32 %v290_v25, 0.0 }
 0x2fd   :  { %v285_v31 = vadd.f32 %v490_v23, %v284_v30  ;;  %v296_v34 = vmax.f32 %v282_v27, 0.0  ;;  %v503_v27 = vld [vmem:[%s763_s11] ss:$0 sm:$0xff] }
 0x2fe   :  { %v299_v33 = vmax.f32 %v293_v29, 0.0 }
 0x2ff   :  { %v297_v35 = vmax.f32 %v285_v31, 0.0 }
 0x300   :  { %v301_v36 = vpack.c.bf16 %v299_v33, %v298_v32 }
 0x301   :  { %v300_v37 = vpack.c.bf16 %v297_v35, %v296_v34 }
 0x303   :  { %542 = vmatprep.mubr.msk.bf16.mxu0 %vm341_vm1, %v300_v37 }
 0x304   :  { %543 = vmatmul.mubr.msk.bf16.vlgmr.msra.gmra.mrb[0].mxu0 %vm341_vm1, %v301_v36 }
 0x3d7   :  { %v544_v39 = vpop.f32.mrb[0].mxu0 }
 0x3d8   :  { %v382_v40 = vpop.f32.mrb[1].mxu0  ;;  %v391_v41 = vadd.f32 %v544_v39, %v495_v38 }
 0x3d9   :  { %v383_v42 = vadd.f32 %v495_v38, %v382_v40  ;;  %v545_v43 = vpop.f32.mrb[2].mxu0 }
 0x3da   :  { %v385_v44 = vpop.f32.mrb[3].mxu0  ;;  %v394_v45 = vadd.f32 %v545_v43, %v495_v38  ;;  %v399_v50 = vadd.f32 %v391_v41, %v214_v18 }
 0x3db   :  { %v386_v46 = vadd.f32 %v495_v38, %v385_v44  ;;  %v397_v47 = vadd.f32 %v383_v42, %v212_v14 }
 0x3dc   :  { %v400_v52 = vadd.f32 %v394_v45, %v215_v19  ;;  %v409_v53 = vsel %vm77_vm0, %v399_v50, 0.0 }
 0x3dd   :  { %v403_v48 = vsel %vm77_vm0, %v397_v47, 0.0  ;;  %v398_v49 = vadd.f32 %v386_v46, %v213_v15 }
 0x3de   :  { %404 = vadd.xlane.f32.xlu0 %v403_v48  ;;  %v412_v54 = vsel %vm77_vm0, %v400_v52, 0.0 }
 0x3df   :  { %v406_v51 = vsel %vm77_vm0, %v398_v49, 0.0 }
 0x3e0   :  { %407 = vadd.xlane.f32.xlu1 %v406_v51 }
 0x3e2   :  { %410 = vadd.xlane.f32.xlu0 %v409_v53 }
 0x3e4   :  { %413 = vadd.xlane.f32.xlu1 %v412_v54 }
 0x46b   :  { %v405_v55 = vpop.xlane.xlu0 %404 }
 0x46c   :  { %v415_v56 = vmul.f32 0.03125, %v405_v55 }
 0x46d   :  { %v408_v57 = vpop.xlane.xlu1 %407 }
 0x46e   :  { %v419_v58 = vsub.f32 %v397_v47, %v415_v56  ;;  %v416_v59 = vmul.f32 0.03125, %v408_v57 }
 0x46f   :  { %v411_v60 = vpop.xlane.xlu0 %410 }
 0x470   :  { %v420_v61 = vsub.f32 %v398_v49, %v416_v59  ;;  %v417_v62 = vmul.f32 0.03125, %v411_v60  ;;  %v423_v63 = vmul.f32 %v419_v58, %v419_v58 }
 0x471   :  { %v414_v0 = vpop.xlane.xlu1 %413 }
 0x472   :  { %v421_v1 = vsub.f32 %v399_v50, %v417_v62  ;;  %v418_v2 = vmul.f32 0.03125, %v414_v0  ;;  %v427_v3 = vsel %vm77_vm0, %v423_v63, 0.0  ;;  %v424_v4 = vmul.f32 %v420_v61, %v420_v61 }
 0x473   :  { %428 = vadd.xlane.f32.xlu0 %v427_v3 }
 0x474   :  { %v422_v5 = vsub.f32 %v400_v52, %v418_v2  ;;  %v430_v6 = vsel %vm77_vm0, %v424_v4, 0.0  ;;  %v425_v7 = vmul.f32 %v421_v1, %v421_v1 }
 0x475   :  { %431 = vadd.xlane.f32.xlu1 %v430_v6 }
 0x476   :  { %v433_v8 = vsel %vm77_vm0, %v425_v7, 0.0  ;;  %v426_v9 = vmul.f32 %v422_v5, %v422_v5 }
 0x477   :  { %434 = vadd.xlane.f32.xlu0 %v433_v8 }
 0x478   :  { %v436_v10 = vsel %vm77_vm0, %v426_v9, 0.0 }
 0x479   :  { %437 = vadd.xlane.f32.xlu1 %v436_v10 }
 0x500   :  { %v429_v11 = vpop.xlane.xlu0 %428 }
 0x501   :  { %v439_v12 = vmul.f32 0.03125, %v429_v11 }
 0x502   :  { %v432_v13 = vpop.xlane.xlu1 %431 }
 0x503   :  { %v443_v14 = vadd.f32 1e-05, %v439_v12  ;;  %v440_v15 = vmul.f32 0.03125, %v432_v13 }
 0x504   :  { %v435_v16 = vpop.xlane.xlu0 %434 }
 0x505   :  { %562 = vrsqrt.f32 %v443_v14  ;;  %v444_v17 = vadd.f32 1e-05, %v440_v15  ;;  %v441_v18 = vmul.f32 0.03125, %v435_v16 }
 0x506   :  { %v438_v19 = vpop.xlane.xlu1 %437 }
 0x507   :  { %564 = vrsqrt.f32 %v444_v17  ;;  %v445_v20 = vadd.f32 1e-05, %v441_v18  ;;  %v442_v21 = vmul.f32 0.03125, %v438_v19 }
 0x509   :  { %566 = vrsqrt.f32 %v445_v20  ;;  %v446_v22 = vadd.f32 1e-05, %v442_v21 }
 0x50b   :  { %568 = vrsqrt.f32 %v446_v22 }
 0x50f   :  { %v563_v23 = vpop.eup %562 }
 0x510   :  { %v451_v25 = vmul.f32 %v563_v23, %v419_v58 }
 0x511   :  { %v565_v26 = vpop.eup %564 }
 0x512   :  { %v461_v28 = vmul.f32 %v502_v24, %v451_v25  ;;  %v452_v29 = vmul.f32 %v565_v26, %v420_v61 }
 0x513   :  { %v567_v30 = vpop.eup %566 }
 0x514   :  { %v471_v31 = vadd.f32 %v503_v27, %v461_v28  ;;  %v462_v32 = vmul.f32 %v502_v24, %v452_v29  ;;  %v453_v33 = vmul.f32 %v567_v30, %v421_v1 }
 0x515   :  { %v569_v34 = vpop.eup %568 }
 0x516   :  { %475 = vst.msk [vmem:[%s764_s14] sm:$0xff] %vm77_vm0, %v471_v31  ;;  %v472_v35 = vadd.f32 %v503_v27, %v462_v32  ;;  %v463_v36 = vmul.f32 %v502_v24, %v453_v33  ;;  %v454_v37 = vmul.f32 %v569_v34, %v422_v5 }
 0x518   :  { %476 = vst.msk [vmem:[%s764_s14 + $0x8] sm:$0xff] %vm77_vm0, %v472_v35  ;;  %v473_v38 = vadd.f32 %v503_v27, %v463_v36  ;;  %v464_v39 = vmul.f32 %v502_v24, %v454_v37 }
 0x51a   :  { %477 = vst.msk [vmem:[%s764_s14 + $0x10] sm:$0xff] %vm77_vm0, %v473_v38  ;;  %v474_v40 = vadd.f32 %v503_v27, %v464_v39 }
 0x51c   :  { %478 = vst.msk [vmem:[%s764_s14 + $0x18] sm:$0xff] %vm77_vm0, %v474_v40 }

// kernel: encoder_forward.11
= control target key start
LH: loop header
LB: loop body
LE: loop exit
PB: predicated region body
PF: predicated region fallthrough
CT: control target
= control target key end

     0   :  { %vm78_vm0 = vcmask 261120   ;;  %s891_s0 = inlined_call_operand.vmem [shape: f32[32,32], index: 0, kind: input, shape index: {}]   ;;  %s892_s1 = inlined_call_operand.vmem [shape: f32[32,32], index: 1, kind: input, shape index: {}]   ;;  %s893_s2 = inlined_call_operand.vmem [shape: bf16[32,32], index: 2, kind: input, shape index: {}]   ;;  %s894_s3 = inlined_call_operand.vmem [shape: f32[1,32], index: 3, kind: input, shape index: {}]   ;;  %s895_s4 = inlined_call_operand.vmem [shape: bf16[32,64], index: 4, kind: input, shape index: {}]   ;;  %s896_s5 = inlined_call_operand.vmem [shape: f32[1,64], index: 5, kind: input, shape index: {}]   ;;  %s897_s6 = inlined_call_operand.vmem [shape: bf16[64,32], index: 6, kind: input, shape index: {}]   ;;  %s898_s7 = inlined_call_operand.vmem [shape: f32[1,32], index: 7, kind: input, shape index: {}]   ;;  %s899_s8 = inlined_call_operand.vmem [shape: f32[1,32], index: 8, kind: input, shape index: {}]   ;;  %s900_s9 = inlined_call_operand.vmem [shape: f32[1,32], index: 9, kind: input, shape index: {}]   ;;  %s901_s10 = inlined_call_operand.vmem [shape: f32[1,32], index: 10, kind: input, shape index: {}]   ;;  %s902_s11 = inlined_call_operand.vmem [shape: f32[1,32], index: 11, kind: input, shape index: {}]   ;;  %s903_s12 = inlined_call_operand.vmem [shape: f32[1,32], index: 12, kind: input, shape index: {}]   ;;  %s904_s13 = inlined_call_operand.vmem [shape: f32[1,32], index: 13, kind: input, shape index: {}]   ;;  %s905_s14 = inlined_call_operand.hbm [shape: f32[32,32], index: 14, kind: output, shape index: {}]  }
   0x1   :  { %v638_v0 = vld [vmem:[%s893_s2] sm:$0xff]   ;;  %v639_v1 = vld [vmem:[%s893_s2 + $0x8] sm:$0xff]   ;;  %v51_v4 = vld [vmem:[%s892_s1 + $0x10] sm:$0xff] }
   0x2   :  { %607 = vmatprep.subr.bf16.mxu1 %v638_v0  ;;  %v49_v2 = vld [vmem:[%s892_s1] sm:$0xff]  ;;  %v50_v3 = vld [vmem:[%s892_s1 + $0x8] sm:$0xff]  ;;  %v52_v6 = vld [vmem:[%s892_s1 + $0x18] sm:$0xff] }
   0x3   :  { %608 = vmatpush3.bf16.msra.mxu1 %v638_v0  ;;  %v53_v5 = vpack.c.bf16 %v50_v3, %v49_v2  ;;  %v54_v7 = vpack.c.bf16 %v52_v6, %v51_v4 }
   0x4   :  { %609 = vmatprep.subr.bf16.mxu1 %v639_v1 }
   0x5   :  { %611 = vmatprep.mubr.msk.bf16.mxu1 %vm78_vm0, %v53_v5 }
   0x7   :  { %610 = vmatpush3.bf16.msra.mxu1 %v639_v1 }
   0x8   :  { %19 = vsyncpa [#allocation3], 0  ;;  %v570_v8 = vld [vmem:[%s894_s3] ss:$0 sm:$0xff]  ;;  %v136_v10 = vld [vmem:[%s891_s0 + $0x10] sm:$0xff]  ;;  %vm342_vm1 = vcmask 523264  }
   0x9   :  { %v134_v13 = vld [vmem:[%s891_s0] sm:$0xff]  ;;  %v137_v16 = vld [vmem:[%s891_s0 + $0x18] sm:$0xff]  ;;  %v135_v20 = vld [vmem:[%s891_s0 + $0x8] sm:$0xff]  ;;  %s694_s0 = smov [#allocation2]  }
   0xa   :  { %612 = vmatmul.mubr.msk.bf16.vlgmr.msra.gmra.mrb[0].mxu1 %vm78_vm0, %v54_v7  ;;  %v640_v49 = vld [vmem:[%s895_s4] sm:$0xff]   ;;  %v641_v50 = vld [vmem:[%s895_s4 + $0x8] sm:$0xff]  }
   0xb   :  { %615 = vmatprep.subr.bf16.mxu1 %v640_v49  ;;  %v642_v51 = vld [vmem:[%s897_s6] sm:$0xff]   ;;  %v643_v52 = vld [vmem:[%s897_s6 + $0x8] sm:$0xff]  }
   0xc   :  { %616 = vmatpush3.bf16.msra.mxu1 %v640_v49  ;;  %623 = vmatprep.subr.bf16.mxu0 %v642_v51  ;;  %v575_v3 = vld [vmem:[%s899_s8] ss:$0 sm:$0xff] }
   0xd   :  { %617 = vmatprep.subr.bf16.mxu1 %v641_v50  ;;  %624 = vmatpush3.bf16.msra.mxu0 %v642_v51 }
   0xe   :  { %625 = vmatprep.subr.bf16.mxu0 %v643_v52 }
  0x10   :  { %618 = vmatpush3.bf16.msra.mxu1 %v641_v50 }
  0x11   :  { %626 = vmatpush3.bf16.msra.mxu0 %v643_v52 }
  0xdd   :  { %v613_v9 = vpop.f32.mrb[0].mxu1 }
  0xde   :  { %v128_v11 = vadd.f32 %v613_v9, %v570_v8  ;;  %v119_v12 = vpop.f32.mrb[1].mxu1  ;;  %v576_v9 = vld [vmem:[%s900_s9] ss:$0 sm:$0xff] }
  0xdf   :  { %v120_v14 = vadd.f32 %v570_v8, %v119_v12  ;;  %v614_v15 = vpop.f32.mrb[2].mxu1 }
  0xe0   :  { %v131_v17 = vadd.f32 %v614_v15, %v570_v8  ;;  %v122_v18 = vpop.f32.mrb[3].mxu1  ;;  %v140_v19 = vadd.f32 %v136_v10, %v128_v11 }
  0xe1   :  { %v123_v21 = vadd.f32 %v570_v8, %v122_v18  ;;  %v138_v22 = vadd.f32 %v134_v13, %v120_v14 }
  0xe2   :  { %v150_v23 = vsel %vm78_vm0, %v140_v19, 0.0  ;;  %v141_v24 = vadd.f32 %v137_v16, %v131_v17 }
  0xe3   :  { %151 = vadd.xlane.f32.xlu1 %v150_v23  ;;  %v144_v25 = vsel %vm78_vm0, %v138_v22, 0.0  ;;  %v139_v26 = vadd.f32 %v135_v20, %v123_v21  ;;  %v644_v21 = vld [vmem:[%s897_s6 + $0x10] sm:$0xff]   ;;  %v577_v23 = vld [vmem:[%s896_s5] ss:$0 sm:$0xff] }
  0xe4   :  { %145 = vadd.xlane.f32.xlu0 %v144_v25  ;;  %v153_v27 = vsel %vm78_vm0, %v141_v24, 0.0  ;;  %627 = vmatprep.subr.bf16.mxu0 %v644_v21 }
  0xe5   :  { %v147_v28 = vsel %vm78_vm0, %v139_v26, 0.0  ;;  %628 = vmatpush3.bf16.msra.mxu0 %v644_v21 }
  0xe7   :  { %154 = vadd.xlane.f32.xlu1 %v153_v27 }
  0xe8   :  { %148 = vadd.xlane.f32.xlu0 %v147_v28 }
 0x170   :  { %v152_v29 = vpop.xlane.xlu1 %151 }
 0x171   :  { %v159_v30 = vmul.f32 0.03125, %v152_v29  ;;  %v146_v31 = vpop.xlane.xlu0 %145 }
 0x172   :  { %v157_v32 = vmul.f32 0.03125, %v146_v31 }
 0x173   :  { %v163_v33 = vsub.f32 %v140_v19, %v159_v30 }
 0x174   :  { %v161_v34 = vsub.f32 %v138_v22, %v157_v32  ;;  %v155_v35 = vpop.xlane.xlu1 %154  ;;  %v645_v22 = vld [vmem:[%s897_s6 + $0x18] sm:$0xff]  }
 0x175   :  { %v160_v36 = vmul.f32 0.03125, %v155_v35  ;;  %v149_v37 = vpop.xlane.xlu0 %148  ;;  %v167_v43 = vmul.f32 %v163_v33, %v163_v33  ;;  %629 = vmatprep.subr.bf16.mxu0 %v645_v22 }
 0x176   :  { %v158_v38 = vmul.f32 0.03125, %v149_v37  ;;  %v165_v39 = vmul.f32 %v161_v34, %v161_v34  ;;  %630 = vmatpush3.bf16.msra.mxu0 %v645_v22 }
 0x177   :  { %v164_v40 = vsub.f32 %v141_v24, %v160_v36  ;;  %v175_v45 = vsel %vm78_vm0, %v167_v43, 0.0 }
 0x178   :  { %v162_v41 = vsub.f32 %v139_v26, %v158_v38  ;;  %v169_v42 = vsel %vm78_vm0, %v165_v39, 0.0  ;;  %v582_v38 = vld [vmem:[%s898_s7] ss:$0 sm:$0xff] }
 0x179   :  { %170 = vadd.xlane.f32.xlu0 %v169_v42  ;;  %v168_v47 = vmul.f32 %v164_v40, %v164_v40 }
 0x17a   :  { %v166_v44 = vmul.f32 %v162_v41, %v162_v41 }
 0x17b   :  { %v178_v48 = vsel %vm78_vm0, %v168_v47, 0.0 }
 0x17c   :  { %v172_v46 = vsel %vm78_vm0, %v166_v44, 0.0 }
 0x17d   :  { %176 = vadd.xlane.f32.xlu0 %v175_v45  ;;  %173 = vadd.xlane.f32.xlu1 %v172_v46 }
 0x181   :  { %179 = vadd.xlane.f32.xlu1 %v178_v48 }
 0x206   :  { %v171_v53 = vpop.xlane.xlu0 %170 }
 0x207   :  { %v181_v54 = vmul.f32 0.03125, %v171_v53 }
 0x209   :  { %v185_v55 = vadd.f32 1e-05, %v181_v54 }
 0x20a   :  { %v174_v56 = vpop.xlane.xlu1 %173  ;;  %v177_v57 = vpop.xlane.xlu0 %176 }
 0x20b   :  { %646 = vrsqrt.f32 %v185_v55  ;;  %v182_v58 = vmul.f32 0.03125, %v174_v56  ;;  %v183_v59 = vmul.f32 0.03125, %v177_v57 }
 0x20d   :  { %v186_v60 = vadd.f32 1e-05, %v182_v58  ;;  %v187_v61 = vadd.f32 1e-05, %v183_v59 }
 0x20e   :  { %v180_v62 = vpop.xlane.xlu1 %179 }
 0x20f   :  { %648 = vrsqrt.f32 %v186_v60  ;;  %v184_v63 = vmul.f32 0.03125, %v180_v62 }
 0x210   :  { %650 = vrsqrt.f32 %v187_v61 }
 0x211   :  { %v188_v0 = vadd.f32 1e-05, %v184_v63 }
 0x213   :  { %652 = vrsqrt.f32 %v188_v0 }
 0x215   :  { %v647_v1 = vpop.eup %646 }
 0x216   :  { %v193_v2 = vmul.f32 %v647_v1, %v161_v34 }
 0x218   :  { %v203_v7 = vmul.f32 %v575_v3, %v193_v2 }
 0x219   :  { %v649_v4 = vpop.eup %648 }
 0x21a   :  { %v651_v5 = vpop.eup %650  ;;  %v194_v6 = vmul.f32 %v649_v4, %v162_v41  ;;  %v213_v14 = vadd.f32 %v576_v9, %v203_v7 }
 0x21b   :  { %v195_v8 = vmul.f32 %v651_v5, %v163_v33 }
 0x21c   :  { %v204_v10 = vmul.f32 %v575_v3, %v194_v6 }
 0x21d   :  { %v653_v11 = vpop.eup %652  ;;  %v205_v12 = vmul.f32 %v575_v3, %v195_v8 }
 0x21e   :  { %v196_v13 = vmul.f32 %v653_v11, %v164_v40  ;;  %v214_v15 = vadd.f32 %v576_v9, %v204_v10 }
 0x21f   :  { %v215_v18 = vadd.f32 %v576_v9, %v205_v12 }
 0x220   :  { %v206_v16 = vmul.f32 %v575_v3, %v196_v13  ;;  %v217_v17 = vpack.c.bf16 %v214_v15, %v213_v14 }
 0x222   :  { %619 = vmatprep.mubr.msk.bf16.mxu1 %vm78_vm0, %v217_v17  ;;  %v216_v19 = vadd.f32 %v576_v9, %v206_v16 }
 0x224   :  { %v218_v20 = vpack.c.bf16 %v216_v19, %v215_v18 }
 0x226   :  { %620 = vmatmul.mubr.msk.bf16.vlgmr.msra.gmra.mrb[4].mxu1 %vm78_vm0, %v218_v20 }
 0x2f9   :  { %v621_v24 = vpop.f32.mrb[4].mxu1 }
 0x2fa   :  { %v291_v25 = vadd.f32 %v621_v24, %v577_v23  ;;  %v282_v26 = vpop.f32.mrb[5].mxu1  ;;  %v589_v24 = vld [vmem:[%s901_s10] ss:$0 sm:$0xff] }
 0x2fb   :  { %v283_v27 = vadd.f32 %v577_v23, %v282_v26  ;;  %v622_v28 = vpop.f32.mrb[6].mxu1 }
 0x2fc   :  { %v294_v29 = vadd.f32 %v622_v28, %v577_v23  ;;  %v285_v30 = vpop.f32.mrb[7].mxu1  ;;  %v299_v32 = vmax.f32 %v291_v25, 0.0 }
 0x2fd   :  { %v286_v31 = vadd.f32 %v577_v23, %v285_v30  ;;  %v297_v34 = vmax.f32 %v283_v27, 0.0  ;;  %v590_v27 = vld [vmem:[%s902_s11] ss:$0 sm:$0xff] }
 0x2fe   :  { %v300_v33 = vmax.f32 %v294_v29, 0.0 }
 0x2ff   :  { %v298_v35 = vmax.f32 %v286_v31, 0.0 }
 0x300   :  { %v302_v36 = vpack.c.bf16 %v300_v33, %v299_v32 }
 0x301   :  { %v301_v37 = vpack.c.bf16 %v298_v35, %v297_v34 }
 0x303   :  { %631 = vmatprep.mubr.msk.bf16.mxu0 %vm342_vm1, %v301_v37 }
 0x304   :  { %632 = vmatmul.mubr.msk.bf16.vlgmr.msra.gmra.mrb[0].mxu0 %vm342_vm1, %v302_v36 }
 0x3d7   :  { %v633_v39 = vpop.f32.mrb[0].mxu0 }
 0x3d8   :  { %v383_v40 = vpop.f32.mrb[1].mxu0  ;;  %v392_v41 = vadd.f32 %v633_v39, %v582_v38 }
 0x3d9   :  { %v384_v42 = vadd.f32 %v582_v38, %v383_v40  ;;  %v634_v43 = vpop.f32.mrb[2].mxu0 }
 0x3da   :  { %v386_v44 = vpop.f32.mrb[3].mxu0  ;;  %v395_v45 = vadd.f32 %v634_v43, %v582_v38  ;;  %v400_v50 = vadd.f32 %v392_v41, %v215_v18 }
 0x3db   :  { %v387_v46 = vadd.f32 %v582_v38, %v386_v44  ;;  %v398_v47 = vadd.f32 %v384_v42, %v213_v14 }
 0x3dc   :  { %v401_v52 = vadd.f32 %v395_v45, %v216_v19  ;;  %v410_v53 = vsel %vm78_vm0, %v400_v50, 0.0 }
 0x3dd   :  { %v404_v48 = vsel %vm78_vm0, %v398_v47, 0.0  ;;  %v399_v49 = vadd.f32 %v387_v46, %v214_v15 }
 0x3de   :  { %405 = vadd.xlane.f32.xlu0 %v404_v48  ;;  %v413_v54 = vsel %vm78_vm0, %v401_v52, 0.0 }
 0x3df   :  { %v407_v51 = vsel %vm78_vm0, %v399_v49, 0.0 }
 0x3e0   :  { %408 = vadd.xlane.f32.xlu1 %v407_v51 }
 0x3e2   :  { %411 = vadd.xlane.f32.xlu0 %v410_v53 }
 0x3e4   :  { %414 = vadd.xlane.f32.xlu1 %v413_v54 }
 0x46b   :  { %v406_v55 = vpop.xlane.xlu0 %405 }
 0x46c   :  { %v416_v56 = vmul.f32 0.03125, %v406_v55 }
 0x46d   :  { %v409_v57 = vpop.xlane.xlu1 %408 }
 0x46e   :  { %v420_v58 = vsub.f32 %v398_v47, %v416_v56  ;;  %v417_v59 = vmul.f32 0.03125, %v409_v57 }
 0x46f   :  { %v412_v60 = vpop.xlane.xlu0 %411 }
 0x470   :  { %v421_v61 = vsub.f32 %v399_v49, %v417_v59  ;;  %v418_v62 = vmul.f32 0.03125, %v412_v60  ;;  %v424_v63 = vmul.f32 %v420_v58, %v420_v58 }
 0x471   :  { %v415_v0 = vpop.xlane.xlu1 %414 }
 0x472   :  { %v422_v1 = vsub.f32 %v400_v50, %v418_v62  ;;  %v419_v2 = vmul.f32 0.03125, %v415_v0  ;;  %v428_v3 = vsel %vm78_vm0, %v424_v63, 0.0  ;;  %v425_v4 = vmul.f32 %v421_v61, %v421_v61 }
 0x473   :  { %429 = vadd.xlane.f32.xlu0 %v428_v3 }
 0x474   :  { %v423_v5 = vsub.f32 %v401_v52, %v419_v2  ;;  %v431_v6 = vsel %vm78_vm0, %v425_v4, 0.0  ;;  %v426_v7 = vmul.f32 %v422_v1, %v422_v1 }
 0x475   :  { %432 = vadd.xlane.f32.xlu1 %v431_v6 }
 0x476   :  { %v434_v8 = vsel %vm78_vm0, %v426_v7, 0.0  ;;  %v427_v9 = vmul.f32 %v423_v5, %v423_v5 }
 0x477   :  { %435 = vadd.xlane.f32.xlu0 %v434_v8 }
 0x478   :  { %v437_v10 = vsel %vm78_vm0, %v427_v9, 0.0 }
 0x479   :  { %438 = vadd.xlane.f32.xlu1 %v437_v10 }
 0x500   :  { %v430_v11 = vpop.xlane.xlu0 %429 }
 0x501   :  { %v440_v12 = vmul.f32 0.03125, %v430_v11 }
 0x502   :  { %v433_v13 = vpop.xlane.xlu1 %432 }
 0x503   :  { %v444_v14 = vadd.f32 1e-05, %v440_v12  ;;  %v441_v15 = vmul.f32 0.03125, %v433_v13 }
 0x504   :  { %v436_v16 = vpop.xlane.xlu0 %435 }
 0x505   :  { %654 = vrsqrt.f32 %v444_v14  ;;  %v445_v17 = vadd.f32 1e-05, %v441_v15  ;;  %v442_v18 = vmul.f32 0.03125, %v436_v16  ;;  %v591_v14 = vld [vmem:[%s903_s12] ss:$0 sm:$0xff]  ;;  %s559_s12 = sshll.u32 %s694_s0, 4  ;;  %s560_s12 = int_to_ptr.vmem [resolvable:$true] %s559_s12 }
 0x506   :  { %v439_v19 = vpop.xlane.xlu1 %438  ;;  %p675_p1 = scmp.lt.s32.totalorder %s560_s12, %s560_s12 }
 0x507   :  { %656 = vrsqrt.f32 %v445_v17  ;;  %v446_v20 = vadd.f32 1e-05, %v442_v18  ;;  %v443_v21 = vmul.f32 0.03125, %v439_v19  ;;  %v592_v17 = vld [vmem:[%s904_s13] ss:$0 sm:$0xff]  ;;  %s670_s13 = scalar_lea.vmem %s560_s12, 512 }
 0x508   :  { %p671_p0 = scmp.ne.s32.totalorder %s560_s12, %s670_s13  ;;  %p676_p2 = scmp.lt.s32.totalorder %s670_s13, %s670_s13 }
 0x509   :  { %658 = vrsqrt.f32 %v446_v20  ;;  %v447_v22 = vadd.f32 1e-05, %v443_v21 }
 0x50a   :  { %p677_p3 = por %p676_p2, %p675_p1 }
 0x50b   :  { %660 = vrsqrt.f32 %v447_v22 }
 0x50c   :  { %p678_p4 = pnand %p677_p3, %p671_p0 }
 0x50f   :  { %v655_v23 = vpop.eup %654 }
 0x510   :  { %v452_v25 = vmul.f32 %v655_v23, %v420_v58 }
 0x511   :  { %v657_v26 = vpop.eup %656 }
 0x512   :  { %v462_v28 = vmul.f32 %v589_v24, %v452_v25  ;;  %v453_v29 = vmul.f32 %v657_v26, %v421_v61 }
 0x513   :  { %v659_v30 = vpop.eup %658 }
 0x514   :  { %v472_v31 = vadd.f32 %v590_v27, %v462_v28  ;;  %v463_v32 = vmul.f32 %v589_v24, %v453_v29  ;;  %v454_v33 = vmul.f32 %v659_v30, %v422_v1 }
 0x515   :  { %v661_v34 = vpop.eup %660 }
 0x516   :  { %v478_v35 = vsel %vm78_vm0, %v472_v31, 0.0  ;;  %v473_v36 = vadd.f32 %v590_v27, %v463_v32  ;;  %v464_v37 = vmul.f32 %v589_v24, %v454_v33  ;;  %v455_v38 = vmul.f32 %v661_v34, %v423_v5 }
 0x517   :  { %479 = vadd.xlane.f32.xlu0 %v478_v35 }
 0x518   :  { %v481_v39 = vsel %vm78_vm0, %v473_v36, 0.0  ;;  %v474_v40 = vadd.f32 %v590_v27, %v464_v37  ;;  %v465_v41 = vmul.f32 %v589_v24, %v455_v38 }
 0x519   :  { %482 = vadd.xlane.f32.xlu1 %v481_v39 }
 0x51a   :  { %v484_v42 = vsel %vm78_vm0, %v474_v40, 0.0  ;;  %v475_v43 = vadd.f32 %v590_v27, %v465_v41 }
 0x51b   :  { %485 = vadd.xlane.f32.xlu0 %v484_v42 }
 0x51c   :  { %v487_v44 = vsel %vm78_vm0, %v475_v43, 0.0 }
 0x51d   :  { %488 = vadd.xlane.f32.xlu1 %v487_v44 }
 0x5a4   :  { %v480_v45 = vpop.xlane.xlu0 %479 }
 0x5a5   :  { %v490_v46 = vmul.f32 0.03125, %v480_v45 }
 0x5a6   :  { %v483_v47 = vpop.xlane.xlu1 %482 }
 0x5a7   :  { %v494_v48 = vsub.f32 %v472_v31, %v490_v46  ;;  %v491_v49 = vmul.f32 0.03125, %v483_v47 }
 0x5a8   :  { %v486_v50 = vpop.xlane.xlu0 %485 }
 0x5a9   :  { %v495_v51 = vsub.f32 %v473_v36, %v491_v49  ;;  %v492_v52 = vmul.f32 0.03125, %v486_v50  ;;  %v498_v53 = vmul.f32 %v494_v48, %v494_v48 }
 0x5aa   :  { %v489_v54 = vpop.xlane.xlu1 %488 }
 0x5ab   :  { %v496_v55 = vsub.f32 %v474_v40, %v492_v52  ;;  %v493_v56 = vmul.f32 0.03125, %v489_v54  ;;  %v502_v57 = vsel %vm78_vm0, %v498_v53, 0.0  ;;  %v499_v58 = vmul.f32 %v495_v51, %v495_v51 }
 0x5ac   :  { %503 = vadd.xlane.f32.xlu0 %v502_v57 }
 0x5ad   :  { %v497_v59 = vsub.f32 %v475_v43, %v493_v56  ;;  %v505_v60 = vsel %vm78_vm0, %v499_v58, 0.0  ;;  %v500_v61 = vmul.f32 %v496_v55, %v496_v55 }
 0x5ae   :  { %506 = vadd.xlane.f32.xlu1 %v505_v60 }
 0x5af   :  { %v508_v62 = vsel %vm78_vm0, %v500_v61, 0.0  ;;  %v501_v63 = vmul.f32 %v497_v59, %v497_v59 }
 0x5b0   :  { %509 = vadd.xlane.f32.xlu0 %v508_v62 }
 0x5b1   :  { %v511_v0 = vsel %vm78_vm0, %v501_v63, 0.0 }
 0x5b2   :  { %512 = vadd.xlane.f32.xlu1 %v511_v0 }
 0x639   :  { %v504_v1 = vpop.xlane.xlu0 %503 }
 0x63a   :  { %v514_v2 = vmul.f32 0.03125, %v504_v1 }
 0x63b   :  { %v507_v3 = vpop.xlane.xlu1 %506 }
 0x63c   :  { %v518_v4 = vadd.f32 1e-05, %v514_v2  ;;  %v515_v5 = vmul.f32 0.03125, %v507_v3 }
 0x63d   :  { %v510_v6 = vpop.xlane.xlu0 %509 }
 0x63e   :  { %662 = vrsqrt.f32 %v518_v4  ;;  %v519_v7 = vadd.f32 1e-05, %v515_v5  ;;  %v516_v8 = vmul.f32 0.03125, %v510_v6 }
 0x63f   :  { %v513_v9 = vpop.xlane.xlu1 %512 }
 0x640   :  { %664 = vrsqrt.f32 %v519_v7  ;;  %v520_v10 = vadd.f32 1e-05, %v516_v8  ;;  %v517_v11 = vmul.f32 0.03125, %v513_v9 }
 0x642   :  { %666 = vrsqrt.f32 %v520_v10  ;;  %v521_v12 = vadd.f32 1e-05, %v517_v11 }
 0x644   :  { %668 = vrsqrt.f32 %v521_v12 }
 0x648   :  { %v663_v13 = vpop.eup %662 }
 0x649   :  { %v526_v15 = vmul.f32 %v663_v13, %v494_v48 }
 0x64a   :  { %v665_v16 = vpop.eup %664 }
 0x64b   :  { %v536_v18 = vmul.f32 %v591_v14, %v526_v15  ;;  %v527_v19 = vmul.f32 %v665_v16, %v495_v51 }
 0x64c   :  { %v667_v20 = vpop.eup %666 }
 0x64d   :  { %v546_v21 = vadd.f32 %v592_v17, %v536_v18  ;;  %v537_v22 = vmul.f32 %v591_v14, %v527_v19  ;;  %v528_v23 = vmul.f32 %v667_v20, %v496_v55 }
 0x64e   :  { %v669_v24 = vpop.eup %668 }
 0x64f   :  { %550 = vst.msk [vmem:[#allocation2] sm:$0xff] %vm78_vm0, %v546_v21  ;;  %v547_v25 = vadd.f32 %v592_v17, %v537_v22  ;;  %v538_v26 = vmul.f32 %v591_v14, %v528_v23  ;;  %v529_v27 = vmul.f32 %v669_v24, %v497_v59 }
 0x651   :  { %551 = vst.msk [vmem:[#allocation2 + $0x8] sm:$0xff] %vm78_vm0, %v547_v25  ;;  %v548_v28 = vadd.f32 %v592_v17, %v538_v26  ;;  %v539_v29 = vmul.f32 %v591_v14, %v529_v27 }
 0x653   :  { %552 = vst.msk [vmem:[#allocation2 + $0x10] sm:$0xff] %vm78_vm0, %v548_v28  ;;  %v549_v30 = vadd.f32 %v592_v17, %v539_v29 }
 0x655   :  { %553 = vst.msk [vmem:[#allocation2 + $0x18] sm:$0xff] %vm78_vm0, %v549_v30 }
 0x656   :  { %681 = shalt.err (!%p678_p4)
}
 0x657   :  { %s682_s18 = scalar_lea.hbm %s905_s14, 512 }
 0x658   :  { %p683_p5 = scmp.ne.s32.totalorder %s905_s14, %s682_s18  ;;  %p686_p6 = scmp.lt.u32.totalorder %s682_s18, %s905_s14 }
 0x65a   :  { %p688_p7 = pnand %p686_p6, %p683_p5 }
 0x65c   :  { %691 = shalt.err (!%p688_p7)
}
 0x65d   :  { %s695_s4 = smov 128   ;;  %s696_s23 = smov 8  }
 0x65e   :  { %565 = dma.vmem_to_hbm [thread:$0]  %s560_s12, 512, %s905_s14, [#allocation3], %s695_s4, %s695_s4, %s696_s23  }
 0x65f   :  { %692 = dma.done.wait [#allocation3], 512  }
 0x660   :  { %693 = vsyncadd [#allocation3], 4294966784 }
 0x661   :  { %569 = vsyncpa [#allocation3], 1 }

</bundles_post_ra>
